<compile_context>
chip_gen: v5e
topology: v5e:2x2
jax: 0.10.0
libtpu: 0.0.40
codegen_flags: <defaults>
</compile_context>

<pallas_src>
import jax
import jax.numpy as jnp
from jax.experimental import pallas as pl
from jax.experimental.pallas import tpu as pltpu

C_IN = 10                 # channels, fixed by the module
L_IN = 100                # length, forced by x.view(-1, 10*50) after pool of stride 2
L_POOL = L_IN // 2
F_IN = C_IN * L_IN        # flattened feature count = 1000
F_PAD = 1024              # lane-padded feature width (8 x 128)
N_TILES = F_PAD // 128    # 8 output column tiles per conv
K_BAND = 384              # K rows per banded conv tile (3 x 128)
BLOCK_B = 256             # max samples per grid step


def _round_up(n, m):
    return ((n + m - 1) // m) * m


def _conv_band_tiles(w):
    """Band-packed Conv1d(k=3, stride=1, pad=1, no bias) in the (L, C) layout.

    Dense equivalent: A[li*C + c, lo*C + o] = w[o, c, li-lo+1] for li-lo in {-1,0,1},
    so y_flat = x_flat @ A with features flattened as l*C + c.  All nonzeros satisfy
    |row - col| <= 2*C - 1 = 19, hence column tile j (cols [128j, 128j+128)) only
    needs rows [128j-19, 128j+146] which fit in the aligned 384-row window
    [128j-128, 128j+256).  Returns (8, 384, 128) bf16 tiles such that
        y[:, 128j:128j+128] = xp[:, 128j:128j+384] @ tiles[j]
    where xp is x zero-padded by 128 lanes on each side.
    """
    o_dim, c_dim, k_dim = w.shape
    assert o_dim == C_IN and c_dim == C_IN
    li = jnp.arange(L_IN)[:, None]                     # input position
    lo = jnp.arange(L_IN)[None, :]                     # output position
    k = li - lo + 1                                    # tap index
    valid = (k >= 0) & (k < k_dim)
    kc = jnp.clip(k, 0, k_dim - 1)
    w_cok = jnp.transpose(w.astype(jnp.float32), (1, 0, 2))       # (C, O, K)
    a = jnp.where(valid[None, None], w_cok[:, :, kc], 0.0)        # (C, O, Li, Lo)
    a = jnp.transpose(a, (2, 0, 3, 1)).reshape(F_IN, F_IN)        # row=li*C+c, col=lo*C+o
    a = jnp.pad(a, ((0, F_PAD - F_IN), (0, F_PAD - F_IN)))        # (1024, 1024)
    a = jnp.pad(a, ((128, 128), (0, 0)))                          # padded row r+128 == feature r
    tiles = jnp.stack([a[128 * j:128 * j + K_BAND, 128 * j:128 * j + 128]
                       for j in range(N_TILES)])
    return tiles.astype(jnp.bfloat16)                             # (8, 384, 128)


def _band_conv(x_feat, band_ref):
    """Block-banded conv matmul: returns (B, F_PAD) f32 from bf16 inputs."""
    b = x_feat.shape[0]
    zpad = jnp.zeros((b, 128), x_feat.dtype)
    xp = jnp.concatenate([zpad, x_feat, zpad], axis=1)            # (B, F_PAD + 256), aligned
    tiles = [jnp.dot(xp[:, 128 * j:128 * j + K_BAND], band_ref[j],
                     preferred_element_type=jnp.float32)
             for j in range(N_TILES)]
    return jnp.concatenate(tiles, axis=1)                         # (B, F_PAD) f32


def _vcnn_kernel(x_ref, a1_ref, a2_ref, wl1_ref, b1_ref, w2_ref, b2_ref, o_ref):
    # bf16 MXU inputs, f32 accumulation throughout.
    x = x_ref[...].astype(jnp.bfloat16)                           # (B, 1024)

    # conv1 + relu, conv2 + relu (block-banded MXU matmuls).
    y = jnp.maximum(_band_conv(x, a1_ref), 0.0)
    y = jnp.maximum(_band_conv(y.astype(jnp.bfloat16), a2_ref), 0.0)   # (B, 1024) f32

    # max_pool1d(2): in the (L, C) layout the pool partner sits C_IN=10 lanes to the
    # right.  Valid pooled lanes are 20t + c (t < 50), whose partner lane 20t+c+10
    # is always <= 999, so the circular wrap of the roll never reaches a lane that
    # wl1 reads (all other wl1 rows are zero by construction).
    m = jnp.maximum(y, jnp.roll(y, -C_IN, axis=1))                # (B, 1024)

    # linear1 + relu: single (B, 1024) @ (1024, H) bf16 contraction.
    hidden = jnp.dot(m.astype(jnp.bfloat16), wl1_ref[...],
                     preferred_element_type=jnp.float32)
    hidden = jnp.maximum(hidden + b1_ref[...], 0.0)               # (B, H) f32

    # linear2 as W2 @ hidden^T so batch sits on the lane axis (lane-dense store).
    logits = jax.lax.dot_general(
        w2_ref[...], hidden, (((1,), (1,)), ((), ())),
        preferred_element_type=jnp.float32) + b2_ref[...]          # (O, B)

    # sigmoid via EUP exp + approximate reciprocal (both off the VPU slot).
    o_ref[...] = pl.reciprocal(1.0 + jnp.exp(-logits), approx=True).astype(o_ref.dtype)


def vcnn_bce_2_forward(x, params, *, max_block_b=BLOCK_B):
    N = x.shape[0]
    H = params["linear1_w"].shape[0]
    O = params["linear2_w"].shape[0]
    assert x.shape[1:] == (C_IN, L_IN)
    assert params["linear1_w"].shape[1] == C_IN * L_POOL

    # ---- one-time parameter plumbing (plain JAX, outside the kernel) ----
    a1_t = _conv_band_tiles(params["conv1_w"])                    # (8, 384, 128) bf16
    a2_t = _conv_band_tiles(params["conv2_w"])                    # (8, 384, 128) bf16

    # linear1 weight (H, 500) -> zero-interleaved (1024, H) bf16: the pooled value
    # for torch index c*50 + t lives at kernel lane 20t + c; odd-l lanes (20t+10+c)
    # and lanes >= 1000 are zero so the un-pooled roll residue never contributes.
    w1 = params["linear1_w"].astype(jnp.float32).reshape(H, C_IN, L_POOL)
    w1 = jnp.transpose(w1, (2, 1, 0))                             # (t, c, H)
    wl1 = jnp.zeros((L_POOL, 2, C_IN, H), jnp.float32).at[:, 0].set(w1)
    wl1 = jnp.pad(wl1.reshape(F_IN, H), ((0, F_PAD - F_IN), (0, 0))).astype(jnp.bfloat16)
    b1 = params["linear1_b"].reshape(1, H).astype(jnp.float32)
    b2 = params["linear2_b"].reshape(O, 1).astype(jnp.float32)
    w2 = params["linear2_w"].astype(jnp.float32)                  # (O, H), tiny -> keep f32

    # ---- adaptive batch blocking: >=2 grid steps when N allows (v7x megacore) ----
    block_b = min(max_block_b, max(8, _round_up(-(-N // 2), 8)))
    g = pl.cdiv(N, block_b)
    n_pad = g * block_b

    # (N, C, L) -> channel-interleaved (N, L*C), lane-padded to 1024.
    xf = jnp.transpose(x.astype(jnp.float32), (0, 2, 1)).reshape(N, F_IN)
    xf = jnp.pad(xf, ((0, n_pad - N), (0, F_PAD - F_IN)))

    def full_spec(a):
        nd = a.ndim
        return pl.BlockSpec(a.shape, lambda i, _nd=nd: (0,) * _nd)

    weight_bytes = 2 * (a1_t.size + a2_t.size + wl1.size) + 4 * (b1.size + w2.size + b2.size)
    cost = pl.CostEstimate(
        flops=2 * n_pad * (2 * N_TILES * K_BAND * 128 + F_PAD * H + H * O),
        transcendentals=n_pad * O,
        bytes_accessed=n_pad * F_PAD * 4 + int(weight_bytes) + n_pad * O * 4,
    )

    out = pl.pallas_call(
        _vcnn_kernel,
        out_shape=jax.ShapeDtypeStruct((g, O, block_b), jnp.float32),
        grid_spec=pltpu.PrefetchScalarGridSpec(
            num_scalar_prefetch=0,
            grid=(g,),
            in_specs=[
                pl.BlockSpec((block_b, F_PAD), lambda i: (i, 0)),  # x block (f32)
                full_spec(a1_t), full_spec(a2_t),                  # banded conv weights
                full_spec(wl1), full_spec(b1),                     # linear1
                full_spec(w2), full_spec(b2),                      # linear2
            ],
            out_specs=pl.BlockSpec((None, O, block_b), lambda i: (i, 0, 0)),
        ),
        compiler_params=pltpu.CompilerParams(
            dimension_semantics=("parallel",),       # shard batch blocks over v7x's 2 TCs
            vmem_limit_bytes=32 * 1024 * 1024,       # ~12 MiB used; < 64 MiB (v7x)
        ),
        cost_estimate=cost,
    )(xf, a1_t, a2_t, wl1, b1, w2, b2)

    # (g, O, block_b) -> (N, O)
    out = jnp.transpose(out, (0, 2, 1)).reshape(n_pad, O)[:N]
    return out.astype(x.dtype)


def init_params(key, hidden1, output):
    """Deterministic synthetic init (uniform, fan-in scaled like PyTorch defaults)."""
    ks = jax.random.split(key, 6)

    def u(k, shape, fan_in):
        bound = 1.0 / (fan_in ** 0.5)
        return jax.random.uniform(k, shape, jnp.float32, -bound, bound)

    return {
        "conv1_w": u(ks[0], (C_IN, C_IN, 3), C_IN * 3),
        "conv2_w": u(ks[1], (C_IN, C_IN, 3), C_IN * 3),
        "linear1_w": u(ks[2], (hidden1, C_IN * L_POOL), C_IN * L_POOL),
        "linear1_b": u(ks[3], (hidden1,), C_IN * L_POOL),
        "linear2_w": u(ks[4], (output, hidden1), hidden1),
        "linear2_b": u(ks[5], (output,), hidden1),
    }


def vcnn_bce_2_reference(x, params):
    """Pure-JAX reference mirroring the PyTorch forward, for validation."""
    def conv1d(x, w):
        return jax.lax.conv_general_dilated(
            x, w, window_strides=(1,), padding=((1, 1),),
            dimension_numbers=("NCH", "OIH", "NCH"))

    y = jax.nn.relu(conv1d(x, params["conv1_w"]))
    y = jax.nn.relu(conv1d(y, params["conv2_w"]))
    N, C, L = y.shape
    y = jnp.max(y.reshape(N, C, L // 2, 2), axis=-1)              # max_pool1d(2)
    y = y.reshape(N, C * (L // 2))                                # view(-1, 10*50)
    y = jax.nn.relu(y @ params["linear1_w"].T + params["linear1_b"])
    out = y @ params["linear2_w"].T + params["linear2_b"]
    return jax.nn.sigmoid(out)


if __name__ == "__main__":
    key = jax.random.PRNGKey(0)
    kx, kp = jax.random.split(key)

    batch, hidden1, output = 4, 32, 1
    params = init_params(kp, hidden1, output)
    x = jax.random.normal(kx, (batch, C_IN, L_IN), jnp.float32)

    out = jax.jit(vcnn_bce_2_forward)(x, params)
    out = jax.block_until_ready(out)

    ref = vcnn_bce_2_reference(x, params)
    assert out.shape == (batch, output), out.shape
    # bf16 MXU inputs (per the perf review) add ~1e-3 relative error per matmul and
    # the sigmoid uses an approximate reciprocal; 1e-2 absolute on a (0,1) sigmoid
    # output is ample for inference parity (the exact-f32 path agreed to ~1e-6).
    err = float(jnp.max(jnp.abs(out - ref)))
    assert jnp.allclose(out, ref, atol=1e-2), err
    print("KERNEL_OK")
</pallas_src>

<mosaic_0001>
module attributes {stable_mosaic.version = 11 : i64} {
  func.func @_vcnn_kernel(%arg0: i32, %arg1: memref<8x1024xf32, #tpu.memory_space<vmem>>, %arg2: memref<8x384x128xbf16, #tpu.memory_space<vmem>>, %arg3: memref<8x384x128xbf16, #tpu.memory_space<vmem>>, %arg4: memref<1024x32xbf16, #tpu.memory_space<vmem>>, %arg5: memref<1x32xf32, #tpu.memory_space<vmem>>, %arg6: memref<1x32xf32, #tpu.memory_space<vmem>>, %arg7: memref<1x1xf32, #tpu.memory_space<vmem>>, %arg8: memref<1x1x8xf32, #tpu.memory_space<vmem>>) attributes {dimension_semantics = [#tpu.dimension_semantics<parallel>], iteration_bounds = array<i64: 1>, scalar_prefetch = 0 : i64, scratch_operands = 0 : i64, tpu.core_type = #tpu.core_type<tc>, window_params = [{transform_indices = @transform_0, window_bounds = array<i64: 8, 1024>}, {pipeline_mode = #tpu.pipeline_mode<synchronous>, transform_indices = @transform_1, window_bounds = array<i64: 8, 384, 128>}, {pipeline_mode = #tpu.pipeline_mode<synchronous>, transform_indices = @transform_2, window_bounds = array<i64: 8, 384, 128>}, {pipeline_mode = #tpu.pipeline_mode<synchronous>, transform_indices = @transform_3, window_bounds = array<i64: 1024, 32>}, {pipeline_mode = #tpu.pipeline_mode<synchronous>, transform_indices = @transform_4, window_bounds = array<i64: 1, 32>}, {pipeline_mode = #tpu.pipeline_mode<synchronous>, transform_indices = @transform_5, window_bounds = array<i64: 1, 32>}, {pipeline_mode = #tpu.pipeline_mode<synchronous>, transform_indices = @transform_6, window_bounds = array<i64: 1, 1>}, {transform_indices = @transform_7, window_bounds = array<i64: 1, 1, 8>}]} {
    %c0 = arith.constant 0 : index
    %c0_0 = arith.constant 0 : index
    %0 = vector.load %arg1[%c0, %c0_0] : memref<8x1024xf32, #tpu.memory_space<vmem>>, vector<8x1024xf32>
    %1 = arith.truncf %0 : vector<8x1024xf32> to vector<8x1024xbf16>
    %cst = arith.constant 0.000000e+00 : bf16
    %2 = vector.broadcast %cst : bf16 to vector<8x128xbf16>
    %3 = tpu.concatenate %2, %1, %2 in 1 : vector<8x128xbf16>, vector<8x1024xbf16>, vector<8x128xbf16> -> vector<8x1280xbf16>
    %4 = vector.extract_strided_slice %3 {offsets = [0, 0], sizes = [8, 384], strides = [1, 1]} : vector<8x1280xbf16> to vector<8x384xbf16>
    %c0_1 = arith.constant 0 : index
    %c0_2 = arith.constant 0 : index
    %c0_3 = arith.constant 0 : index
    %5 = vector.load %arg2[%c0_1, %c0_2, %c0_3] : memref<8x384x128xbf16, #tpu.memory_space<vmem>>, vector<1x384x128xbf16>
    %6 = vector.shape_cast %5 : vector<1x384x128xbf16> to vector<384x128xbf16>
    %cst_4 = arith.constant dense<0.000000e+00> : vector<8x128xf32>
    %7 = tpu.matmul %4, %6, %cst_4 {dimension_numbers = #tpu.dot_dimension_numbers<[1], [0], [0], [1], [0, 0, 1, 1], [], []>} : vector<8x384xbf16>, vector<384x128xbf16>, vector<8x128xf32> -> vector<8x128xf32>
    %8 = vector.extract_strided_slice %3 {offsets = [0, 128], sizes = [8, 384], strides = [1, 1]} : vector<8x1280xbf16> to vector<8x384xbf16>
    %c1 = arith.constant 1 : index
    %c0_5 = arith.constant 0 : index
    %c0_6 = arith.constant 0 : index
    %9 = vector.load %arg2[%c1, %c0_5, %c0_6] : memref<8x384x128xbf16, #tpu.memory_space<vmem>>, vector<1x384x128xbf16>
    %10 = vector.shape_cast %9 : vector<1x384x128xbf16> to vector<384x128xbf16>
    %cst_7 = arith.constant dense<0.000000e+00> : vector<8x128xf32>
    %11 = tpu.matmul %8, %10, %cst_7 {dimension_numbers = #tpu.dot_dimension_numbers<[1], [0], [0], [1], [0, 0, 1, 1], [], []>} : vector<8x384xbf16>, vector<384x128xbf16>, vector<8x128xf32> -> vector<8x128xf32>
    %12 = vector.extract_strided_slice %3 {offsets = [0, 256], sizes = [8, 384], strides = [1, 1]} : vector<8x1280xbf16> to vector<8x384xbf16>
    %c2 = arith.constant 2 : index
    %c0_8 = arith.constant 0 : index
    %c0_9 = arith.constant 0 : index
    %13 = vector.load %arg2[%c2, %c0_8, %c0_9] : memref<8x384x128xbf16, #tpu.memory_space<vmem>>, vector<1x384x128xbf16>
    %14 = vector.shape_cast %13 : vector<1x384x128xbf16> to vector<384x128xbf16>
    %cst_10 = arith.constant dense<0.000000e+00> : vector<8x128xf32>
    %15 = tpu.matmul %12, %14, %cst_10 {dimension_numbers = #tpu.dot_dimension_numbers<[1], [0], [0], [1], [0, 0, 1, 1], [], []>} : vector<8x384xbf16>, vector<384x128xbf16>, vector<8x128xf32> -> vector<8x128xf32>
    %16 = vector.extract_strided_slice %3 {offsets = [0, 384], sizes = [8, 384], strides = [1, 1]} : vector<8x1280xbf16> to vector<8x384xbf16>
    %c3 = arith.constant 3 : index
    %c0_11 = arith.constant 0 : index
    %c0_12 = arith.constant 0 : index
    %17 = vector.load %arg2[%c3, %c0_11, %c0_12] : memref<8x384x128xbf16, #tpu.memory_space<vmem>>, vector<1x384x128xbf16>
    %18 = vector.shape_cast %17 : vector<1x384x128xbf16> to vector<384x128xbf16>
    %cst_13 = arith.constant dense<0.000000e+00> : vector<8x128xf32>
    %19 = tpu.matmul %16, %18, %cst_13 {dimension_numbers = #tpu.dot_dimension_numbers<[1], [0], [0], [1], [0, 0, 1, 1], [], []>} : vector<8x384xbf16>, vector<384x128xbf16>, vector<8x128xf32> -> vector<8x128xf32>
    %20 = vector.extract_strided_slice %3 {offsets = [0, 512], sizes = [8, 384], strides = [1, 1]} : vector<8x1280xbf16> to vector<8x384xbf16>
    %c4 = arith.constant 4 : index
    %c0_14 = arith.constant 0 : index
    %c0_15 = arith.constant 0 : index
    %21 = vector.load %arg2[%c4, %c0_14, %c0_15] : memref<8x384x128xbf16, #tpu.memory_space<vmem>>, vector<1x384x128xbf16>
    %22 = vector.shape_cast %21 : vector<1x384x128xbf16> to vector<384x128xbf16>
    %cst_16 = arith.constant dense<0.000000e+00> : vector<8x128xf32>
    %23 = tpu.matmul %20, %22, %cst_16 {dimension_numbers = #tpu.dot_dimension_numbers<[1], [0], [0], [1], [0, 0, 1, 1], [], []>} : vector<8x384xbf16>, vector<384x128xbf16>, vector<8x128xf32> -> vector<8x128xf32>
    %24 = vector.extract_strided_slice %3 {offsets = [0, 640], sizes = [8, 384], strides = [1, 1]} : vector<8x1280xbf16> to vector<8x384xbf16>
    %c5 = arith.constant 5 : index
    %c0_17 = arith.constant 0 : index
    %c0_18 = arith.constant 0 : index
    %25 = vector.load %arg2[%c5, %c0_17, %c0_18] : memref<8x384x128xbf16, #tpu.memory_space<vmem>>, vector<1x384x128xbf16>
    %26 = vector.shape_cast %25 : vector<1x384x128xbf16> to vector<384x128xbf16>
    %cst_19 = arith.constant dense<0.000000e+00> : vector<8x128xf32>
    %27 = tpu.matmul %24, %26, %cst_19 {dimension_numbers = #tpu.dot_dimension_numbers<[1], [0], [0], [1], [0, 0, 1, 1], [], []>} : vector<8x384xbf16>, vector<384x128xbf16>, vector<8x128xf32> -> vector<8x128xf32>
    %28 = vector.extract_strided_slice %3 {offsets = [0, 768], sizes = [8, 384], strides = [1, 1]} : vector<8x1280xbf16> to vector<8x384xbf16>
    %c6 = arith.constant 6 : index
    %c0_20 = arith.constant 0 : index
    %c0_21 = arith.constant 0 : index
    %29 = vector.load %arg2[%c6, %c0_20, %c0_21] : memref<8x384x128xbf16, #tpu.memory_space<vmem>>, vector<1x384x128xbf16>
    %30 = vector.shape_cast %29 : vector<1x384x128xbf16> to vector<384x128xbf16>
    %cst_22 = arith.constant dense<0.000000e+00> : vector<8x128xf32>
    %31 = tpu.matmul %28, %30, %cst_22 {dimension_numbers = #tpu.dot_dimension_numbers<[1], [0], [0], [1], [0, 0, 1, 1], [], []>} : vector<8x384xbf16>, vector<384x128xbf16>, vector<8x128xf32> -> vector<8x128xf32>
    %32 = vector.extract_strided_slice %3 {offsets = [0, 896], sizes = [8, 384], strides = [1, 1]} : vector<8x1280xbf16> to vector<8x384xbf16>
    %c7 = arith.constant 7 : index
    %c0_23 = arith.constant 0 : index
    %c0_24 = arith.constant 0 : index
    %33 = vector.load %arg2[%c7, %c0_23, %c0_24] : memref<8x384x128xbf16, #tpu.memory_space<vmem>>, vector<1x384x128xbf16>
    %34 = vector.shape_cast %33 : vector<1x384x128xbf16> to vector<384x128xbf16>
    %cst_25 = arith.constant dense<0.000000e+00> : vector<8x128xf32>
    %35 = tpu.matmul %32, %34, %cst_25 {dimension_numbers = #tpu.dot_dimension_numbers<[1], [0], [0], [1], [0, 0, 1, 1], [], []>} : vector<8x384xbf16>, vector<384x128xbf16>, vector<8x128xf32> -> vector<8x128xf32>
    %36 = tpu.concatenate %7, %11, %15, %19, %23, %27, %31, %35 in 1 : vector<8x128xf32>, vector<8x128xf32>, vector<8x128xf32>, vector<8x128xf32>, vector<8x128xf32>, vector<8x128xf32>, vector<8x128xf32>, vector<8x128xf32> -> vector<8x1024xf32>
    %cst_26 = arith.constant 0.000000e+00 : f32
    %37 = vector.broadcast %cst_26 : f32 to vector<8x1024xf32>
    %38 = arith.maximumf %36, %37 : vector<8x1024xf32>
    %39 = arith.truncf %38 : vector<8x1024xf32> to vector<8x1024xbf16>
    %cst_27 = arith.constant 0.000000e+00 : bf16
    %40 = vector.broadcast %cst_27 : bf16 to vector<8x128xbf16>
    %41 = tpu.concatenate %40, %39, %40 in 1 : vector<8x128xbf16>, vector<8x1024xbf16>, vector<8x128xbf16> -> vector<8x1280xbf16>
    %42 = vector.extract_strided_slice %41 {offsets = [0, 0], sizes = [8, 384], strides = [1, 1]} : vector<8x1280xbf16> to vector<8x384xbf16>
    %c0_28 = arith.constant 0 : index
    %c0_29 = arith.constant 0 : index
    %c0_30 = arith.constant 0 : index
    %43 = vector.load %arg3[%c0_28, %c0_29, %c0_30] : memref<8x384x128xbf16, #tpu.memory_space<vmem>>, vector<1x384x128xbf16>
    %44 = vector.shape_cast %43 : vector<1x384x128xbf16> to vector<384x128xbf16>
    %cst_31 = arith.constant dense<0.000000e+00> : vector<8x128xf32>
    %45 = tpu.matmul %42, %44, %cst_31 {dimension_numbers = #tpu.dot_dimension_numbers<[1], [0], [0], [1], [0, 0, 1, 1], [], []>} : vector<8x384xbf16>, vector<384x128xbf16>, vector<8x128xf32> -> vector<8x128xf32>
    %46 = vector.extract_strided_slice %41 {offsets = [0, 128], sizes = [8, 384], strides = [1, 1]} : vector<8x1280xbf16> to vector<8x384xbf16>
    %c1_32 = arith.constant 1 : index
    %c0_33 = arith.constant 0 : index
    %c0_34 = arith.constant 0 : index
    %47 = vector.load %arg3[%c1_32, %c0_33, %c0_34] : memref<8x384x128xbf16, #tpu.memory_space<vmem>>, vector<1x384x128xbf16>
    %48 = vector.shape_cast %47 : vector<1x384x128xbf16> to vector<384x128xbf16>
    %cst_35 = arith.constant dense<0.000000e+00> : vector<8x128xf32>
    %49 = tpu.matmul %46, %48, %cst_35 {dimension_numbers = #tpu.dot_dimension_numbers<[1], [0], [0], [1], [0, 0, 1, 1], [], []>} : vector<8x384xbf16>, vector<384x128xbf16>, vector<8x128xf32> -> vector<8x128xf32>
    %50 = vector.extract_strided_slice %41 {offsets = [0, 256], sizes = [8, 384], strides = [1, 1]} : vector<8x1280xbf16> to vector<8x384xbf16>
    %c2_36 = arith.constant 2 : index
    %c0_37 = arith.constant 0 : index
    %c0_38 = arith.constant 0 : index
    %51 = vector.load %arg3[%c2_36, %c0_37, %c0_38] : memref<8x384x128xbf16, #tpu.memory_space<vmem>>, vector<1x384x128xbf16>
    %52 = vector.shape_cast %51 : vector<1x384x128xbf16> to vector<384x128xbf16>
    %cst_39 = arith.constant dense<0.000000e+00> : vector<8x128xf32>
    %53 = tpu.matmul %50, %52, %cst_39 {dimension_numbers = #tpu.dot_dimension_numbers<[1], [0], [0], [1], [0, 0, 1, 1], [], []>} : vector<8x384xbf16>, vector<384x128xbf16>, vector<8x128xf32> -> vector<8x128xf32>
    %54 = vector.extract_strided_slice %41 {offsets = [0, 384], sizes = [8, 384], strides = [1, 1]} : vector<8x1280xbf16> to vector<8x384xbf16>
    %c3_40 = arith.constant 3 : index
    %c0_41 = arith.constant 0 : index
    %c0_42 = arith.constant 0 : index
    %55 = vector.load %arg3[%c3_40, %c0_41, %c0_42] : memref<8x384x128xbf16, #tpu.memory_space<vmem>>, vector<1x384x128xbf16>
    %56 = vector.shape_cast %55 : vector<1x384x128xbf16> to vector<384x128xbf16>
    %cst_43 = arith.constant dense<0.000000e+00> : vector<8x128xf32>
    %57 = tpu.matmul %54, %56, %cst_43 {dimension_numbers = #tpu.dot_dimension_numbers<[1], [0], [0], [1], [0, 0, 1, 1], [], []>} : vector<8x384xbf16>, vector<384x128xbf16>, vector<8x128xf32> -> vector<8x128xf32>
    %58 = vector.extract_strided_slice %41 {offsets = [0, 512], sizes = [8, 384], strides = [1, 1]} : vector<8x1280xbf16> to vector<8x384xbf16>
    %c4_44 = arith.constant 4 : index
    %c0_45 = arith.constant 0 : index
    %c0_46 = arith.constant 0 : index
    %59 = vector.load %arg3[%c4_44, %c0_45, %c0_46] : memref<8x384x128xbf16, #tpu.memory_space<vmem>>, vector<1x384x128xbf16>
    %60 = vector.shape_cast %59 : vector<1x384x128xbf16> to vector<384x128xbf16>
    %cst_47 = arith.constant dense<0.000000e+00> : vector<8x128xf32>
    %61 = tpu.matmul %58, %60, %cst_47 {dimension_numbers = #tpu.dot_dimension_numbers<[1], [0], [0], [1], [0, 0, 1, 1], [], []>} : vector<8x384xbf16>, vector<384x128xbf16>, vector<8x128xf32> -> vector<8x128xf32>
    %62 = vector.extract_strided_slice %41 {offsets = [0, 640], sizes = [8, 384], strides = [1, 1]} : vector<8x1280xbf16> to vector<8x384xbf16>
    %c5_48 = arith.constant 5 : index
    %c0_49 = arith.constant 0 : index
    %c0_50 = arith.constant 0 : index
    %63 = vector.load %arg3[%c5_48, %c0_49, %c0_50] : memref<8x384x128xbf16, #tpu.memory_space<vmem>>, vector<1x384x128xbf16>
    %64 = vector.shape_cast %63 : vector<1x384x128xbf16> to vector<384x128xbf16>
    %cst_51 = arith.constant dense<0.000000e+00> : vector<8x128xf32>
    %65 = tpu.matmul %62, %64, %cst_51 {dimension_numbers = #tpu.dot_dimension_numbers<[1], [0], [0], [1], [0, 0, 1, 1], [], []>} : vector<8x384xbf16>, vector<384x128xbf16>, vector<8x128xf32> -> vector<8x128xf32>
    %66 = vector.extract_strided_slice %41 {offsets = [0, 768], sizes = [8, 384], strides = [1, 1]} : vector<8x1280xbf16> to vector<8x384xbf16>
    %c6_52 = arith.constant 6 : index
    %c0_53 = arith.constant 0 : index
    %c0_54 = arith.constant 0 : index
    %67 = vector.load %arg3[%c6_52, %c0_53, %c0_54] : memref<8x384x128xbf16, #tpu.memory_space<vmem>>, vector<1x384x128xbf16>
    %68 = vector.shape_cast %67 : vector<1x384x128xbf16> to vector<384x128xbf16>
    %cst_55 = arith.constant dense<0.000000e+00> : vector<8x128xf32>
    %69 = tpu.matmul %66, %68, %cst_55 {dimension_numbers = #tpu.dot_dimension_numbers<[1], [0], [0], [1], [0, 0, 1, 1], [], []>} : vector<8x384xbf16>, vector<384x128xbf16>, vector<8x128xf32> -> vector<8x128xf32>
    %70 = vector.extract_strided_slice %41 {offsets = [0, 896], sizes = [8, 384], strides = [1, 1]} : vector<8x1280xbf16> to vector<8x384xbf16>
    %c7_56 = arith.constant 7 : index
    %c0_57 = arith.constant 0 : index
    %c0_58 = arith.constant 0 : index
    %71 = vector.load %arg3[%c7_56, %c0_57, %c0_58] : memref<8x384x128xbf16, #tpu.memory_space<vmem>>, vector<1x384x128xbf16>
    %72 = vector.shape_cast %71 : vector<1x384x128xbf16> to vector<384x128xbf16>
    %cst_59 = arith.constant dense<0.000000e+00> : vector<8x128xf32>
    %73 = tpu.matmul %70, %72, %cst_59 {dimension_numbers = #tpu.dot_dimension_numbers<[1], [0], [0], [1], [0, 0, 1, 1], [], []>} : vector<8x384xbf16>, vector<384x128xbf16>, vector<8x128xf32> -> vector<8x128xf32>
    %74 = tpu.concatenate %45, %49, %53, %57, %61, %65, %69, %73 in 1 : vector<8x128xf32>, vector<8x128xf32>, vector<8x128xf32>, vector<8x128xf32>, vector<8x128xf32>, vector<8x128xf32>, vector<8x128xf32>, vector<8x128xf32> -> vector<8x1024xf32>
    %cst_60 = arith.constant 0.000000e+00 : f32
    %75 = vector.broadcast %cst_60 : f32 to vector<8x1024xf32>
    %76 = arith.maximumf %74, %75 : vector<8x1024xf32>
    %77 = vector.extract_strided_slice %76 {offsets = [0, 10], sizes = [8, 1014], strides = [1, 1]} : vector<8x1024xf32> to vector<8x1014xf32>
    %78 = vector.extract_strided_slice %76 {offsets = [0, 0], sizes = [8, 10], strides = [1, 1]} : vector<8x1024xf32> to vector<8x10xf32>
    %79 = tpu.concatenate %77, %78 in 1 : vector<8x1014xf32>, vector<8x10xf32> -> vector<8x1024xf32>
    %80 = arith.maximumf %76, %79 : vector<8x1024xf32>
    %81 = arith.truncf %80 : vector<8x1024xf32> to vector<8x1024xbf16>
    %c0_61 = arith.constant 0 : index
    %c0_62 = arith.constant 0 : index
    %82 = vector.load %arg4[%c0_61, %c0_62] : memref<1024x32xbf16, #tpu.memory_space<vmem>>, vector<1024x32xbf16>
    %cst_63 = arith.constant dense<0.000000e+00> : vector<8x32xf32>
    %83 = tpu.matmul %81, %82, %cst_63 {dimension_numbers = #tpu.dot_dimension_numbers<[1], [0], [0], [1], [0, 0, 1, 1], [], []>} : vector<8x1024xbf16>, vector<1024x32xbf16>, vector<8x32xf32> -> vector<8x32xf32>
    %c0_64 = arith.constant 0 : index
    %c0_65 = arith.constant 0 : index
    %84 = vector.load %arg5[%c0_64, %c0_65] : memref<1x32xf32, #tpu.memory_space<vmem>>, vector<1x32xf32>
    %85 = vector.broadcast %84 : vector<1x32xf32> to vector<8x32xf32>
    %86 = arith.addf %83, %85 : vector<8x32xf32>
    %cst_66 = arith.constant 0.000000e+00 : f32
    %87 = vector.broadcast %cst_66 : f32 to vector<8x32xf32>
    %88 = arith.maximumf %86, %87 : vector<8x32xf32>
    %c0_67 = arith.constant 0 : index
    %c0_68 = arith.constant 0 : index
    %89 = vector.load %arg6[%c0_67, %c0_68] : memref<1x32xf32, #tpu.memory_space<vmem>>, vector<1x32xf32>
    %cst_69 = arith.constant dense<0.000000e+00> : vector<1x8xf32>
    %90 = tpu.matmul %89, %88, %cst_69 {dimension_numbers = #tpu.dot_dimension_numbers<[1], [1], [0], [0], [0, 0, 1, 0], [], []>} : vector<1x32xf32>, vector<8x32xf32>, vector<1x8xf32> -> vector<1x8xf32>
    %c0_70 = arith.constant 0 : index
    %c0_71 = arith.constant 0 : index
    %91 = vector.load %arg7[%c0_70, %c0_71] : memref<1x1xf32, #tpu.memory_space<vmem>>, vector<1x1xf32>
    %92 = vector.broadcast %91 : vector<1x1xf32> to vector<1x8xf32>
    %93 = arith.addf %90, %92 : vector<1x8xf32>
    %cst_72 = arith.constant 0.000000e+00 : f32
    %94 = vector.broadcast %cst_72 : f32 to vector<1x8xf32>
    %95 = arith.subf %94, %93 : vector<1x8xf32>
    %96 = math.exp %95 : vector<1x8xf32>
    %cst_73 = arith.constant 1.000000e+00 : f32
    %97 = vector.broadcast %cst_73 : f32 to vector<1x8xf32>
    %98 = arith.addf %97, %96 : vector<1x8xf32>
    %99 = tpu.reciprocal %98 {approx = true} : vector<1x8xf32> -> vector<1x8xf32>
    %c0_74 = arith.constant 0 : index
    %c0_75 = arith.constant 0 : index
    %c0_76 = arith.constant 0 : index
    %100 = vector.load %arg8[%c0_74, %c0_75, %c0_76] : memref<1x1x8xf32, #tpu.memory_space<vmem>>, vector<1x1x8xf32>
    %101 = vector.shape_cast %100 : vector<1x1x8xf32> to vector<1x8xf32>
    %102 = vector.shape_cast %99 : vector<1x8xf32> to vector<1x1x8xf32>
    tpu.vector_store %arg8[%c0_74, %c0_75, %c0_76], %102 {strides = array<i32>} : memref<1x1x8xf32, #tpu.memory_space<vmem>>, vector<1x1x8xf32>,
    return
  }
  func.func @transform_0(%arg0: i32) -> (i32, i32) {
    %c0_i32 = arith.constant 0 : i32
    %c0_i32_0 = arith.constant 0 : i32
    return %arg0, %c0_i32 : i32, i32
  }
  func.func @transform_1(%arg0: i32) -> (i32, i32, i32) {
    %c0_i32 = arith.constant 0 : i32
    %c0_i32_0 = arith.constant 0 : i32
    %c0_i32_1 = arith.constant 0 : i32
    %c0_i32_2 = arith.constant 0 : i32
    return %c0_i32, %c0_i32_0, %c0_i32_1 : i32, i32, i32
  }
  func.func @transform_2(%arg0: i32) -> (i32, i32, i32) {
    %c0_i32 = arith.constant 0 : i32
    %c0_i32_0 = arith.constant 0 : i32
    %c0_i32_1 = arith.constant 0 : i32
    %c0_i32_2 = arith.constant 0 : i32
    return %c0_i32, %c0_i32_0, %c0_i32_1 : i32, i32, i32
  }
  func.func @transform_3(%arg0: i32) -> (i32, i32) {
    %c0_i32 = arith.constant 0 : i32
    %c0_i32_0 = arith.constant 0 : i32
    %c0_i32_1 = arith.constant 0 : i32
    return %c0_i32, %c0_i32_0 : i32, i32
  }
  func.func @transform_4(%arg0: i32) -> (i32, i32) {
    %c0_i32 = arith.constant 0 : i32
    %c0_i32_0 = arith.constant 0 : i32
    %c0_i32_1 = arith.constant 0 : i32
    return %c0_i32, %c0_i32_0 : i32, i32
  }
  func.func @transform_5(%arg0: i32) -> (i32, i32) {
    %c0_i32 = arith.constant 0 : i32
    %c0_i32_0 = arith.constant 0 : i32
    %c0_i32_1 = arith.constant 0 : i32
    return %c0_i32, %c0_i32_0 : i32, i32
  }
  func.func @transform_6(%arg0: i32) -> (i32, i32) {
    %c0_i32 = arith.constant 0 : i32
    %c0_i32_0 = arith.constant 0 : i32
    %c0_i32_1 = arith.constant 0 : i32
    return %c0_i32, %c0_i32_0 : i32, i32
  }
  func.func @transform_7(%arg0: i32) -> (i32, i32, i32) {
    %c0_i32 = arith.constant 0 : i32
    %c0_i32_0 = arith.constant 0 : i32
    %c0_i32_1 = arith.constant 0 : i32
    return %arg0, %c0_i32, %c0_i32_0 : i32, i32, i32
  }
}

</mosaic_0001>

<bundles_post_ra>
// kernel: vcnn_bce_2_forward.1
= control target key start
LH: loop header
LB: loop body
LE: loop exit
PB: predicated region body
PF: predicated region fallthrough
CT: control target
= control target key end

     0   :  { %v7490_v26 = vmov 0   ;;  %vm3851_vm0 = vcmask 965632   ;;  %vm4514_vm1 = vcmask 261120   ;;  %vm4546_vm2 = vcmask 57344   ;;  %s9095_s1 = inlined_call_operand.vmem [shape: bf16[8,384,128], index: 1, kind: input, shape index: {}]   ;;  %s9096_s0 = inlined_call_operand.vmem [shape: f32[8,1024], index: 0, kind: input, shape index: {}]   ;;  %s9097_s2 = inlined_call_operand.vmem [shape: bf16[8,384,128], index: 2, kind: input, shape index: {}]   ;;  %s9098_s3 = inlined_call_operand.vmem [shape: bf16[1024,32], index: 3, kind: input, shape index: {}]   ;;  %s9099_s4 = inlined_call_operand.vmem [shape: f32[1,32], index: 4, kind: input, shape index: {}]   ;;  %s9100_s6 = inlined_call_operand.<no memory space> [shape: f32[1,1], index: 6, kind: input, shape index: {}]   ;;  %s9101_s5 = inlined_call_operand.vmem [shape: f32[1,32], index: 5, kind: input, shape index: {}]   ;;  %s9102_s7 = inlined_call_operand.vmem [shape: f32[1,1,8], index: 7, kind: output, shape index: {}]  }
   0x1   :  { %v7025_v0 = vld [vmem:[%s9095_s1 + $0x38] sm:$0xff]  ;;  %v7024_v4 = vld [vmem:[%s9095_s1 + $0x30] sm:$0xff]  ;;  %v7023_v8 = vld [vmem:[%s9095_s1 + $0x28] sm:$0xff]  ;;  %7483 = vset.pattern.permute.xlu2 %v7490_v26  ;;  %7484 = vset.pattern.permute.xlu0 %v7490_v26 }
   0x2   :  { %v7033_v1 = vld [vmem:[%s9095_s1 + $0x78] sm:$0xff]  ;;  %261 = vmatpush.bf16.msra.mxu0 %v7025_v0  ;;  %v7032_v5 = vld [vmem:[%s9095_s1 + $0x70] sm:$0xff]  ;;  %v7031_v9 = vld [vmem:[%s9095_s1 + $0x68] sm:$0xff] }
   0x3   :  { %v7041_v2 = vld [vmem:[%s9095_s1 + $0xb8] sm:$0xff]  ;;  %274 = vmatpush.bf16.msra.mxu1 %v7033_v1  ;;  %v7040_v6 = vld [vmem:[%s9095_s1 + $0xb0] sm:$0xff]  ;;  %v7039_v10 = vld [vmem:[%s9095_s1 + $0xa8] sm:$0xff] }
   0x4   :  { %v7049_v3 = vld [vmem:[%s9095_s1 + $0xf8] sm:$0xff]  ;;  %287 = vmatpush.bf16.msra.mxu2 %v7041_v2  ;;  %v7048_v7 = vld [vmem:[%s9095_s1 + $0xf0] sm:$0xff]  ;;  %v7047_v11 = vld [vmem:[%s9095_s1 + $0xe8] sm:$0xff] }
   0x5   :  { %493 = vmatpush.bf16.msra.mxu3 %v7049_v3  ;;  %v7022_v12 = vld [vmem:[%s9095_s1 + $0x20] sm:$0xff]  ;;  %v7021_v16 = vld [vmem:[%s9095_s1 + $0x18] sm:$0xff]  ;;  %v7020_v20 = vld [vmem:[%s9095_s1 + $0x10] sm:$0xff] }
   0x6   :  { %262 = vmatpush.bf16.msra.mxu0 %v7024_v4  ;;  %v7030_v13 = vld [vmem:[%s9095_s1 + $0x60] sm:$0xff]  ;;  %v7029_v17 = vld [vmem:[%s9095_s1 + $0x58] sm:$0xff]  ;;  %v7028_v21 = vld [vmem:[%s9095_s1 + $0x50] sm:$0xff] }
   0x7   :  { %275 = vmatpush.bf16.msra.mxu1 %v7032_v5  ;;  %v7038_v14 = vld [vmem:[%s9095_s1 + $0xa0] sm:$0xff]  ;;  %v7037_v18 = vld [vmem:[%s9095_s1 + $0x98] sm:$0xff]  ;;  %v7036_v22 = vld [vmem:[%s9095_s1 + $0x90] sm:$0xff] }
   0x8   :  { %288 = vmatpush.bf16.msra.mxu2 %v7040_v6  ;;  %v7046_v15 = vld [vmem:[%s9095_s1 + $0xe0] sm:$0xff]  ;;  %v7045_v19 = vld [vmem:[%s9095_s1 + $0xd8] sm:$0xff]  ;;  %v7044_v23 = vld [vmem:[%s9095_s1 + $0xd0] sm:$0xff] }
   0x9   :  { %494 = vmatpush.bf16.msra.mxu3 %v7048_v7  ;;  %v29_v24 = vld [vmem:[%s9096_s0] sm:$0xff]  ;;  %v30_v25 = vld [vmem:[%s9096_s0 + $0x8] sm:$0xff]  ;;  %v7057_v38 = vld [vmem:[%s9095_s1 + $0x138] sm:$0xff] }
   0xa   :  { %263 = vmatpush.bf16.msra.mxu0 %v7023_v8  ;;  %v7019_v27 = vld [vmem:[%s9095_s1 + $0x8] sm:$0xff]  ;;  %v37_v29 = vpack.c.bf16 %v30_v25, %v29_v24  ;;  %v7018_v32 = vld [vmem:[%s9095_s1] sm:$0xff]  ;;  %v7065_v39 = vld [vmem:[%s9095_s1 + $0x178] sm:$0xff] }
   0xb   :  { %276 = vmatpush.bf16.msra.mxu1 %v7031_v9  ;;  %v7027_v28 = vld [vmem:[%s9095_s1 + $0x48] sm:$0xff]  ;;  %v7026_v33 = vld [vmem:[%s9095_s1 + $0x40] sm:$0xff]  ;;  %v7073_v40 = vld [vmem:[%s9095_s1 + $0x1b8] sm:$0xff] }
   0xc   :  { %289 = vmatpush.bf16.msra.mxu2 %v7039_v10  ;;  %v7035_v30 = vld [vmem:[%s9095_s1 + $0x88] sm:$0xff]  ;;  %v45_v34 = vunpack.c.l.b16 %v37_v29  ;;  %v7034_v35 = vld [vmem:[%s9095_s1 + $0x80] sm:$0xff]  ;;  %v46_v37 = vunpack.c.h.b16 %v37_v29  ;;  %v7081_v41 = vld [vmem:[%s9095_s1 + $0x1f8] sm:$0xff] }
   0xd   :  { %495 = vmatpush.bf16.msra.mxu3 %v7047_v11  ;;  %v7043_v31 = vld [vmem:[%s9095_s1 + $0xc8] sm:$0xff]  ;;  %v7042_v36 = vld [vmem:[%s9095_s1 + $0xc0] sm:$0xff]  ;;  %v7056_v44 = vld [vmem:[%s9095_s1 + $0x130] sm:$0xff] }
   0xe   :  { %264 = vmatpush.bf16.msra.mxu0 %v7022_v12  ;;  %v53_v42 = vpack.c.b16 %v45_v34, %v45_v34  ;;  %v7648_v43 = vpack.c.b16 %v46_v37, %v46_v37  ;;  %v7064_v45 = vld [vmem:[%s9095_s1 + $0x170] sm:$0xff]  ;;  %v7055_v48 = vld [vmem:[%s9095_s1 + $0x128] sm:$0xff]  ;;  %v7054_v52 = vld [vmem:[%s9095_s1 + $0x120] sm:$0xff] }
   0xf   :  { %277 = vmatpush.bf16.msra.mxu1 %v7030_v13  ;;  %v7072_v46 = vld [vmem:[%s9095_s1 + $0x1b0] sm:$0xff]  ;;  %v7063_v49 = vld [vmem:[%s9095_s1 + $0x168] sm:$0xff]  ;;  %v7062_v53 = vld [vmem:[%s9095_s1 + $0x160] sm:$0xff] }
  0x10   :  { %290 = vmatpush.bf16.msra.mxu2 %v7038_v14  ;;  %v7080_v47 = vld [vmem:[%s9095_s1 + $0x1f0] sm:$0xff]  ;;  %v7071_v50 = vld [vmem:[%s9095_s1 + $0x1a8] sm:$0xff]  ;;  %v7070_v54 = vld [vmem:[%s9095_s1 + $0x1a0] sm:$0xff] }
  0x11   :  { %496 = vmatpush.bf16.msra.mxu3 %v7046_v15  ;;  %v7079_v51 = vld [vmem:[%s9095_s1 + $0x1e8] sm:$0xff]  ;;  %v7078_v55 = vld [vmem:[%s9095_s1 + $0x1e0] sm:$0xff]  ;;  %v7053_v56 = vld [vmem:[%s9095_s1 + $0x118] sm:$0xff] }
  0x12   :  { %265 = vmatpush.bf16.msra.mxu0 %v7021_v16  ;;  %v7061_v57 = vld [vmem:[%s9095_s1 + $0x158] sm:$0xff]  ;;  %v7052_v60 = vld [vmem:[%s9095_s1 + $0x110] sm:$0xff]  ;;  %v7051_v2 = vld [vmem:[%s9095_s1 + $0x108] sm:$0xff] }
  0x13   :  { %278 = vmatpush.bf16.msra.mxu1 %v7029_v17  ;;  %v7069_v58 = vld [vmem:[%s9095_s1 + $0x198] sm:$0xff]  ;;  %v7060_v61 = vld [vmem:[%s9095_s1 + $0x150] sm:$0xff]  ;;  %v7059_v3 = vld [vmem:[%s9095_s1 + $0x148] sm:$0xff] }
  0x14   :  { %291 = vmatpush.bf16.msra.mxu2 %v7037_v18  ;;  %v7077_v59 = vld [vmem:[%s9095_s1 + $0x1d8] sm:$0xff]  ;;  %v7068_v62 = vld [vmem:[%s9095_s1 + $0x190] sm:$0xff]  ;;  %v7067_v5 = vld [vmem:[%s9095_s1 + $0x188] sm:$0xff] }
  0x15   :  { %497 = vmatpush.bf16.msra.mxu3 %v7045_v19  ;;  %v7076_v63 = vld [vmem:[%s9095_s1 + $0x1d0] sm:$0xff]  ;;  %v32_v1 = vld [vmem:[%s9096_s0 + $0x18] sm:$0xff]  ;;  %v7075_v6 = vld [vmem:[%s9095_s1 + $0x1c8] sm:$0xff] }
  0x16   :  { %266 = vmatpush.bf16.msra.mxu0 %v7020_v20  ;;  %v31_v0 = vld [vmem:[%s9096_s0 + $0x10] sm:$0xff]  ;;  %v7050_v7 = vld [vmem:[%s9095_s1 + $0x100] sm:$0xff]  ;;  %v7089_v12 = vld [vmem:[%s9095_s1 + $0x238] sm:$0xff] }
  0x17   :  { %279 = vmatpush.bf16.msra.mxu1 %v7028_v21  ;;  %v7724_v4 = vpack.c.bf16 %v32_v1, %v31_v0  ;;  %v7058_v8 = vld [vmem:[%s9095_s1 + $0x140] sm:$0xff]  ;;  %v7097_v13 = vld [vmem:[%s9095_s1 + $0x278] sm:$0xff]  ;;  %v7088_v17 = vld [vmem:[%s9095_s1 + $0x230] sm:$0xff] }
  0x18   :  { %292 = vmatpush.bf16.msra.mxu2 %v7036_v22  ;;  %v7066_v10 = vld [vmem:[%s9095_s1 + $0x180] sm:$0xff]  ;;  %v7105_v14 = vld [vmem:[%s9095_s1 + $0x2b8] sm:$0xff]  ;;  %v7096_v18 = vld [vmem:[%s9095_s1 + $0x270] sm:$0xff] }
  0x19   :  { %498 = vmatpush.bf16.msra.mxu3 %v7044_v23  ;;  %v47_v9 = vunpack.c.l.b16 %v7724_v4  ;;  %v7074_v11 = vld [vmem:[%s9095_s1 + $0x1c0] sm:$0xff]  ;;  %v7113_v15 = vld [vmem:[%s9095_s1 + $0x2f8] sm:$0xff]  ;;  %v7104_v19 = vld [vmem:[%s9095_s1 + $0x2b0] sm:$0xff] }
  0x1a   :  { %267 = vmatpush.bf16.msra.mxu0 %v7019_v27  ;;  %v7112_v20 = vld [vmem:[%s9095_s1 + $0x2f0] sm:$0xff]  ;;  %v7087_v21 = vld [vmem:[%s9095_s1 + $0x228] sm:$0xff]  ;;  %v7086_v25 = vld [vmem:[%s9095_s1 + $0x220] sm:$0xff] }
  0x1b   :  { %280 = vmatpush.bf16.msra.mxu1 %v7027_v28  ;;  %v7757_v16 = vpack.c.b16 %v47_v9, %v47_v9  ;;  %v7095_v22 = vld [vmem:[%s9095_s1 + $0x268] sm:$0xff]  ;;  %v7094_v27 = vld [vmem:[%s9095_s1 + $0x260] sm:$0xff]  ;;  %v7084_v34 = vld [vmem:[%s9095_s1 + $0x210] sm:$0xff] }
  0x1c   :  { %293 = vmatpush.bf16.msra.mxu2 %v7035_v30  ;;  %v7103_v23 = vld [vmem:[%s9095_s1 + $0x2a8] sm:$0xff]  ;;  %v7102_v28 = vld [vmem:[%s9095_s1 + $0x2a0] sm:$0xff]  ;;  %v7085_v30 = vld [vmem:[%s9095_s1 + $0x218] sm:$0xff] }
  0x1d   :  { %499 = vmatpush.bf16.msra.mxu3 %v7043_v31  ;;  %v7111_v24 = vld [vmem:[%s9095_s1 + $0x2e8] sm:$0xff]  ;;  %v7110_v29 = vld [vmem:[%s9095_s1 + $0x2e0] sm:$0xff]  ;;  %v7093_v31 = vld [vmem:[%s9095_s1 + $0x258] sm:$0xff] }
  0x1e   :  { %268 = vmatpush.bf16.msra.mxu0 %v7018_v32  ;;  %v7101_v32 = vld [vmem:[%s9095_s1 + $0x298] sm:$0xff]  ;;  %v7108_v37 = vld [vmem:[%s9095_s1 + $0x2d0] sm:$0xff]  ;;  %v7143_v0 = vld [vmem:[%s9095_s1 + $0x3e8] sm:$0xff] }
  0x1f   :  { %281 = vmatpush.bf16.msra.mxu1 %v7026_v33  ;;  %v7109_v33 = vld [vmem:[%s9095_s1 + $0x2d8] sm:$0xff]  ;;  %v7118_v1 = vld [vmem:[%s9095_s1 + $0x320] sm:$0xff]  ;;  %v7116_v9 = vld [vmem:[%s9095_s1 + $0x310] sm:$0xff] }
  0x20   :  { %294 = vmatpush.bf16.msra.mxu2 %v7034_v35  ;;  %v7092_v35 = vld [vmem:[%s9095_s1 + $0x250] sm:$0xff] }
  0x21   :  { %500 = vmatpush.bf16.msra.mxu3 %v7042_v36  ;;  %269 = vmatmul.bf16.vlgmr.msra.gmra.mxu0 %v7490_v26  ;;  %v7100_v36 = vld [vmem:[%s9095_s1 + $0x290] sm:$0xff] }
  0x22   :  { %506 = vmatpush.bf16.msrb.mxu0 %v7057_v38  ;;  %282 = vmatmul.bf16.vlgmr.msra.gmra.mxu1 %v53_v42  ;;  %v33_v38 = vld [vmem:[%s9096_s0 + $0x20] sm:$0xff] }
  0x23   :  { %519 = vmatpush.bf16.msrb.mxu1 %v7065_v39  ;;  %295 = vmatmul.bf16.vlgmr.msra.gmra.mxu2 %v7648_v43  ;;  %v34_v39 = vld [vmem:[%s9096_s0 + $0x28] sm:$0xff] }
  0x24   :  { %725 = vmatpush.bf16.msrb.mxu2 %v7073_v40  ;;  %501 = vmatmul.bf16.vlgmr.msra.gmra.mxu3 %v53_v42  ;;  %v7083_v40 = vld [vmem:[%s9095_s1 + $0x208] sm:$0xff]  ;;  %v7835_v42 = vpack.c.bf16 %v34_v39, %v33_v38  ;;  %v7166_v38 = vld [vmem:[%s9095_s1 + $0x4a0] sm:$0xff] }
  0x25   :  { %738 = vmatpush.bf16.msrb.mxu3 %v7081_v41  ;;  %v7091_v41 = vld [vmem:[%s9095_s1 + $0x248] sm:$0xff]  ;;  %v7174_v39 = vld [vmem:[%s9095_s1 + $0x4e0] sm:$0xff] }
  0x26   :  { %507 = vmatpush.bf16.msrb.mxu0 %v7056_v44  ;;  %v7107_v44 = vld [vmem:[%s9095_s1 + $0x2c8] sm:$0xff] }
  0x27   :  { %520 = vmatpush.bf16.msrb.mxu1 %v7064_v45  ;;  %v7082_v45 = vld [vmem:[%s9095_s1 + $0x200] sm:$0xff] }
  0x28   :  { %726 = vmatpush.bf16.msrb.mxu2 %v7072_v46  ;;  %v7090_v46 = vld [vmem:[%s9095_s1 + $0x240] sm:$0xff] }
  0x29   :  { %739 = vmatpush.bf16.msrb.mxu3 %v7080_v47  ;;  %v48_v47 = vunpack.c.h.b16 %v7724_v4  ;;  %v7142_v4 = vld [vmem:[%s9095_s1 + $0x3e0] sm:$0xff] }
  0x2a   :  { %508 = vmatpush.bf16.msrb.mxu0 %v7055_v48  ;;  %v49_v48 = vunpack.c.l.b16 %v7835_v42 }
  0x2b   :  { %521 = vmatpush.bf16.msrb.mxu1 %v7063_v49  ;;  %v7098_v49 = vld [vmem:[%s9095_s1 + $0x280] sm:$0xff] }
  0x2c   :  { %727 = vmatpush.bf16.msrb.mxu2 %v7071_v50  ;;  %v7106_v50 = vld [vmem:[%s9095_s1 + $0x2c0] sm:$0xff] }
  0x2d   :  { %740 = vmatpush.bf16.msrb.mxu3 %v7079_v51  ;;  %v7121_v51 = vld [vmem:[%s9095_s1 + $0x338] sm:$0xff] }
  0x2e   :  { %509 = vmatpush.bf16.msrb.mxu0 %v7054_v52  ;;  %v7129_v52 = vld [vmem:[%s9095_s1 + $0x378] sm:$0xff] }
  0x2f   :  { %522 = vmatpush.bf16.msrb.mxu1 %v7062_v53  ;;  %v7137_v53 = vld [vmem:[%s9095_s1 + $0x3b8] sm:$0xff] }
  0x30   :  { %728 = vmatpush.bf16.msrb.mxu2 %v7070_v54  ;;  %v7145_v54 = vld [vmem:[%s9095_s1 + $0x3f8] sm:$0xff] }
  0x31   :  { %741 = vmatpush.bf16.msrb.mxu3 %v7078_v55  ;;  %v7869_v55 = vpack.c.b16 %v48_v47, %v48_v47  ;;  %v7172_v47 = vld [vmem:[%s9095_s1 + $0x4d0] sm:$0xff] }
  0x32   :  { %510 = vmatpush.bf16.msrb.mxu0 %v7053_v56  ;;  %v7871_v56 = vpack.c.b16 %v49_v48, %v49_v48  ;;  %v35_v48 = vld [vmem:[%s9096_s0 + $0x30] sm:$0xff] }
  0x33   :  { %523 = vmatpush.bf16.msrb.mxu1 %v7061_v57  ;;  %v7120_v57 = vld [vmem:[%s9095_s1 + $0x330] sm:$0xff] }
  0x34   :  { %729 = vmatpush.bf16.msrb.mxu2 %v7069_v58  ;;  %v7128_v58 = vld [vmem:[%s9095_s1 + $0x370] sm:$0xff] }
  0x35   :  { %742 = vmatpush.bf16.msrb.mxu3 %v7077_v59  ;;  %v7136_v59 = vld [vmem:[%s9095_s1 + $0x3b0] sm:$0xff] }
  0x36   :  { %511 = vmatpush.bf16.msrb.mxu0 %v7052_v60  ;;  %v7144_v60 = vld [vmem:[%s9095_s1 + $0x3f0] sm:$0xff] }
  0x37   :  { %524 = vmatpush.bf16.msrb.mxu1 %v7060_v61  ;;  %v7119_v61 = vld [vmem:[%s9095_s1 + $0x328] sm:$0xff] }
  0x38   :  { %730 = vmatpush.bf16.msrb.mxu2 %v7068_v62  ;;  %v7127_v62 = vld [vmem:[%s9095_s1 + $0x368] sm:$0xff] }
  0x39   :  { %743 = vmatpush.bf16.msrb.mxu3 %v7076_v63  ;;  %v7135_v63 = vld [vmem:[%s9095_s1 + $0x3a8] sm:$0xff] }
  0x3a   :  { %512 = vmatpush.bf16.msrb.mxu0 %v7051_v2  ;;  %v7126_v2 = vld [vmem:[%s9095_s1 + $0x360] sm:$0xff] }
  0x3b   :  { %525 = vmatpush.bf16.msrb.mxu1 %v7059_v3  ;;  %v7134_v3 = vld [vmem:[%s9095_s1 + $0x3a0] sm:$0xff] }
  0x3c   :  { %731 = vmatpush.bf16.msrb.mxu2 %v7067_v5  ;;  %v7117_v5 = vld [vmem:[%s9095_s1 + $0x318] sm:$0xff] }
  0x3d   :  { %744 = vmatpush.bf16.msrb.mxu3 %v7075_v6  ;;  %v7125_v6 = vld [vmem:[%s9095_s1 + $0x358] sm:$0xff] }
  0x3e   :  { %513 = vmatpush.bf16.msrb.mxu0 %v7050_v7  ;;  %v7133_v7 = vld [vmem:[%s9095_s1 + $0x398] sm:$0xff] }
  0x3f   :  { %526 = vmatpush.bf16.msrb.mxu1 %v7058_v8  ;;  %v7141_v8 = vld [vmem:[%s9095_s1 + $0x3d8] sm:$0xff] }
  0x40   :  { %732 = vmatpush.bf16.msrb.mxu2 %v7066_v10  ;;  %v7124_v10 = vld [vmem:[%s9095_s1 + $0x350] sm:$0xff] }
  0x41   :  { %745 = vmatpush.bf16.msrb.mxu3 %v7074_v11  ;;  %514 = vmatmul.bf16.vlgmr.msrb.gmra.mxu0 %v7648_v43  ;;  %v7132_v11 = vld [vmem:[%s9095_s1 + $0x390] sm:$0xff] }
  0x42   :  { %751 = vmatpush.bf16.msra.mxu0 %v7089_v12  ;;  %527 = vmatmul.bf16.vlgmr.msrb.gmra.mxu1 %v7757_v16  ;;  %v7140_v12 = vld [vmem:[%s9095_s1 + $0x3d0] sm:$0xff] }
  0x43   :  { %957 = vmatpush.bf16.msra.mxu1 %v7097_v13  ;;  %733 = vmatmul.bf16.vlgmr.msrb.gmra.mxu2 %v7648_v43  ;;  %v7099_v43 = vld [vmem:[%s9095_s1 + $0x288] sm:$0xff] }
  0x44   :  { %970 = vmatpush.bf16.msra.mxu2 %v7105_v14  ;;  %746 = vmatmul.bf16.vlgmr.msrb.gmra.mxu3 %v7757_v16  ;;  %v7115_v13 = vld [vmem:[%s9095_s1 + $0x308] sm:$0xff] }
  0x45   :  { %983 = vmatpush.bf16.msra.mxu3 %v7113_v15  ;;  %v7123_v14 = vld [vmem:[%s9095_s1 + $0x348] sm:$0xff] }
  0x46   :  { %752 = vmatpush.bf16.msra.mxu0 %v7088_v17  ;;  %v7131_v15 = vld [vmem:[%s9095_s1 + $0x388] sm:$0xff]  ;;  %v7114_v17 = vld [vmem:[%s9095_s1 + $0x300] sm:$0xff] }
  0x47   :  { %958 = vmatpush.bf16.msra.mxu1 %v7096_v18  ;;  %v7122_v18 = vld [vmem:[%s9095_s1 + $0x340] sm:$0xff] }
  0x48   :  { %971 = vmatpush.bf16.msra.mxu2 %v7104_v19  ;;  %v7130_v19 = vld [vmem:[%s9095_s1 + $0x380] sm:$0xff] }
  0x49   :  { %984 = vmatpush.bf16.msra.mxu3 %v7112_v20  ;;  %v7138_v20 = vld [vmem:[%s9095_s1 + $0x3c0] sm:$0xff] }
  0x4a   :  { %753 = vmatpush.bf16.msra.mxu0 %v7087_v21  ;;  %v50_v21 = vunpack.c.h.b16 %v7835_v42  ;;  %v7165_v42 = vld [vmem:[%s9095_s1 + $0x498] sm:$0xff] }
  0x4b   :  { %959 = vmatpush.bf16.msra.mxu1 %v7095_v22  ;;  %v7153_v22 = vld [vmem:[%s9095_s1 + $0x438] sm:$0xff] }
  0x4c   :  { %972 = vmatpush.bf16.msra.mxu2 %v7103_v23  ;;  %v7161_v23 = vld [vmem:[%s9095_s1 + $0x478] sm:$0xff] }
  0x4d   :  { %985 = vmatpush.bf16.msra.mxu3 %v7111_v24  ;;  %v7169_v24 = vld [vmem:[%s9095_s1 + $0x4b8] sm:$0xff] }
  0x4e   :  { %754 = vmatpush.bf16.msra.mxu0 %v7086_v25  ;;  %v7177_v25 = vld [vmem:[%s9095_s1 + $0x4f8] sm:$0xff] }
  0x4f   :  { %960 = vmatpush.bf16.msra.mxu1 %v7094_v27  ;;  %v7974_v27 = vpack.c.b16 %v50_v21, %v50_v21 }
  0x50   :  { %973 = vmatpush.bf16.msra.mxu2 %v7102_v28  ;;  %v7152_v28 = vld [vmem:[%s9095_s1 + $0x430] sm:$0xff] }
  0x51   :  { %986 = vmatpush.bf16.msra.mxu3 %v7110_v29  ;;  %v7160_v29 = vld [vmem:[%s9095_s1 + $0x470] sm:$0xff] }
  0x52   :  { %755 = vmatpush.bf16.msra.mxu0 %v7085_v30  ;;  %v7168_v30 = vld [vmem:[%s9095_s1 + $0x4b0] sm:$0xff] }
  0x53   :  { %961 = vmatpush.bf16.msra.mxu1 %v7093_v31  ;;  %v7176_v31 = vld [vmem:[%s9095_s1 + $0x4f0] sm:$0xff] }
  0x54   :  { %974 = vmatpush.bf16.msra.mxu2 %v7101_v32  ;;  %v7151_v32 = vld [vmem:[%s9095_s1 + $0x428] sm:$0xff] }
  0x55   :  { %987 = vmatpush.bf16.msra.mxu3 %v7109_v33  ;;  %v7159_v33 = vld [vmem:[%s9095_s1 + $0x468] sm:$0xff] }
  0x56   :  { %756 = vmatpush.bf16.msra.mxu0 %v7084_v34  ;;  %v7167_v34 = vld [vmem:[%s9095_s1 + $0x4a8] sm:$0xff] }
  0x57   :  { %962 = vmatpush.bf16.msra.mxu1 %v7092_v35  ;;  %v7175_v35 = vld [vmem:[%s9095_s1 + $0x4e8] sm:$0xff] }
  0x58   :  { %975 = vmatpush.bf16.msra.mxu2 %v7100_v36  ;;  %v7150_v36 = vld [vmem:[%s9095_s1 + $0x420] sm:$0xff] }
  0x59   :  { %988 = vmatpush.bf16.msra.mxu3 %v7108_v37  ;;  %v7158_v37 = vld [vmem:[%s9095_s1 + $0x460] sm:$0xff] }
  0x5a   :  { %757 = vmatpush.bf16.msra.mxu0 %v7083_v40  ;;  %v7149_v40 = vld [vmem:[%s9095_s1 + $0x418] sm:$0xff] }
  0x5b   :  { %963 = vmatpush.bf16.msra.mxu1 %v7091_v41  ;;  %v7157_v41 = vld [vmem:[%s9095_s1 + $0x458] sm:$0xff] }
  0x5c   :  { %976 = vmatpush.bf16.msra.mxu2 %v7099_v43  ;;  %v7173_v43 = vld [vmem:[%s9095_s1 + $0x4d8] sm:$0xff] }
  0x5d   :  { %989 = vmatpush.bf16.msra.mxu3 %v7107_v44  ;;  %v7148_v44 = vld [vmem:[%s9095_s1 + $0x410] sm:$0xff] }
  0x5e   :  { %758 = vmatpush.bf16.msra.mxu0 %v7082_v45  ;;  %v7156_v45 = vld [vmem:[%s9095_s1 + $0x450] sm:$0xff] }
  0x5f   :  { %964 = vmatpush.bf16.msra.mxu1 %v7090_v46  ;;  %v7164_v46 = vld [vmem:[%s9095_s1 + $0x490] sm:$0xff] }
  0x60   :  { %977 = vmatpush.bf16.msra.mxu2 %v7098_v49  ;;  %v36_v49 = vld [vmem:[%s9096_s0 + $0x38] sm:$0xff] }
  0x61   :  { %990 = vmatpush.bf16.msra.mxu3 %v7106_v50  ;;  %759 = vmatmul.bf16.vlgmr.msra.gmra.mxu0 %v7869_v55  ;;  %v7147_v50 = vld [vmem:[%s9095_s1 + $0x408] sm:$0xff] }
  0x62   :  { %1189 = vmatpush.bf16.msrb.mxu0 %v7121_v51  ;;  %965 = vmatmul.bf16.vlgmr.msra.gmra.mxu1 %v7757_v16  ;;  %v7139_v16 = vld [vmem:[%s9095_s1 + $0x3c8] sm:$0xff] }
  0x63   :  { %1202 = vmatpush.bf16.msrb.mxu1 %v7129_v52  ;;  %978 = vmatmul.bf16.vlgmr.msra.gmra.mxu2 %v7869_v55  ;;  %v7155_v51 = vld [vmem:[%s9095_s1 + $0x448] sm:$0xff]  ;;  %v8052_v52 = vpack.c.bf16 %v36_v49, %v35_v48 }
  0x64   :  { %1215 = vmatpush.bf16.msrb.mxu2 %v7137_v53  ;;  %991 = vmatmul.bf16.vlgmr.msra.gmra.mxu3 %v7871_v56  ;;  %v7163_v53 = vld [vmem:[%s9095_s1 + $0x488] sm:$0xff] }
  0x65   :  { %1421 = vmatpush.bf16.msrb.mxu3 %v7145_v54  ;;  %v7171_v54 = vld [vmem:[%s9095_s1 + $0x4c8] sm:$0xff] }
  0x66   :  { %1190 = vmatpush.bf16.msrb.mxu0 %v7120_v57  ;;  %v51_v57 = vunpack.c.l.b16 %v8052_v52  ;;  %v7215_v48 = vld [vmem:[%s9097_s2 + $0x28] sm:$0xff] }
  0x67   :  { %1203 = vmatpush.bf16.msrb.mxu1 %v7128_v58  ;;  %v7162_v58 = vld [vmem:[%s9095_s1 + $0x480] sm:$0xff]  ;;  %v7223_v49 = vld [vmem:[%s9097_s2 + $0x68] sm:$0xff] }
  0x68   :  { %1216 = vmatpush.bf16.msrb.mxu2 %v7136_v59  ;;  %v7170_v59 = vld [vmem:[%s9095_s1 + $0x4c0] sm:$0xff] }
  0x69   :  { %1422 = vmatpush.bf16.msrb.mxu3 %v7144_v60  ;;  %v7185_v60 = vld [vmem:[%s9095_s1 + $0x538] sm:$0xff] }
  0x6a   :  { %1191 = vmatpush.bf16.msrb.mxu0 %v7119_v61  ;;  %v7193_v61 = vld [vmem:[%s9095_s1 + $0x578] sm:$0xff] }
  0x6b   :  { %1204 = vmatpush.bf16.msrb.mxu1 %v7127_v62  ;;  %v7201_v62 = vld [vmem:[%s9095_s1 + $0x5b8] sm:$0xff] }
  0x6c   :  { %1217 = vmatpush.bf16.msrb.mxu2 %v7135_v63  ;;  %v7209_v63 = vld [vmem:[%s9095_s1 + $0x5f8] sm:$0xff] }
  0x6d   :  { %1423 = vmatpush.bf16.msrb.mxu3 %v7143_v0  ;;  %v8085_v0 = vpack.c.b16 %v51_v57, %v51_v57  ;;  %v7238_v57 = vld [vmem:[%s9097_s2 + $0xe0] sm:$0xff] }
  0x6e   :  { %1192 = vmatpush.bf16.msrb.mxu0 %v7118_v1  ;;  %v7184_v1 = vld [vmem:[%s9095_s1 + $0x530] sm:$0xff] }
  0x6f   :  { %1205 = vmatpush.bf16.msrb.mxu1 %v7126_v2  ;;  %v7192_v2 = vld [vmem:[%s9095_s1 + $0x570] sm:$0xff] }
  0x70   :  { %1218 = vmatpush.bf16.msrb.mxu2 %v7134_v3  ;;  %v7200_v3 = vld [vmem:[%s9095_s1 + $0x5b0] sm:$0xff] }
  0x71   :  { %1424 = vmatpush.bf16.msrb.mxu3 %v7142_v4  ;;  %v7208_v4 = vld [vmem:[%s9095_s1 + $0x5f0] sm:$0xff] }
  0x72   :  { %1193 = vmatpush.bf16.msrb.mxu0 %v7117_v5  ;;  %v7183_v5 = vld [vmem:[%s9095_s1 + $0x528] sm:$0xff] }
  0x73   :  { %1206 = vmatpush.bf16.msrb.mxu1 %v7125_v6  ;;  %v7191_v6 = vld [vmem:[%s9095_s1 + $0x568] sm:$0xff] }
  0x74   :  { %1219 = vmatpush.bf16.msrb.mxu2 %v7133_v7  ;;  %v7199_v7 = vld [vmem:[%s9095_s1 + $0x5a8] sm:$0xff] }
  0x75   :  { %1425 = vmatpush.bf16.msrb.mxu3 %v7141_v8  ;;  %v7207_v8 = vld [vmem:[%s9095_s1 + $0x5e8] sm:$0xff] }
  0x76   :  { %1194 = vmatpush.bf16.msrb.mxu0 %v7116_v9 }
  0x77   :  { %1207 = vmatpush.bf16.msrb.mxu1 %v7124_v10 }
  0x78   :  { %1220 = vmatpush.bf16.msrb.mxu2 %v7132_v11  ;;  %v7182_v11 = vld [vmem:[%s9095_s1 + $0x520] sm:$0xff] }
  0x79   :  { %1426 = vmatpush.bf16.msrb.mxu3 %v7140_v12  ;;  %v7190_v12 = vld [vmem:[%s9095_s1 + $0x560] sm:$0xff] }
  0x7a   :  { %1195 = vmatpush.bf16.msrb.mxu0 %v7115_v13  ;;  %v7198_v13 = vld [vmem:[%s9095_s1 + $0x5a0] sm:$0xff] }
  0x7b   :  { %1208 = vmatpush.bf16.msrb.mxu1 %v7123_v14  ;;  %v7206_v14 = vld [vmem:[%s9095_s1 + $0x5e0] sm:$0xff] }
  0x7c   :  { %1221 = vmatpush.bf16.msrb.mxu2 %v7131_v15  ;;  %v7181_v15 = vld [vmem:[%s9095_s1 + $0x518] sm:$0xff] }
  0x7d   :  { %1427 = vmatpush.bf16.msrb.mxu3 %v7139_v16  ;;  %v7189_v16 = vld [vmem:[%s9095_s1 + $0x558] sm:$0xff] }
  0x7e   :  { %1196 = vmatpush.bf16.msrb.mxu0 %v7114_v17  ;;  %v7197_v17 = vld [vmem:[%s9095_s1 + $0x598] sm:$0xff] }
  0x7f   :  { %1209 = vmatpush.bf16.msrb.mxu1 %v7122_v18  ;;  %v7205_v18 = vld [vmem:[%s9095_s1 + $0x5d8] sm:$0xff] }
  0x80   :  { %1222 = vmatpush.bf16.msrb.mxu2 %v7130_v19 }
  0x81   :  { %1428 = vmatpush.bf16.msrb.mxu3 %v7138_v20  ;;  %1197 = vmatmul.bf16.vlgmr.msrb.gmra.mxu0 %v7869_v55  ;;  %v7146_v55 = vld [vmem:[%s9095_s1 + $0x400] sm:$0xff] }
  0x82   :  { %1434 = vmatpush.bf16.msra.mxu0 %v7153_v22  ;;  %1210 = vmatmul.bf16.vlgmr.msrb.gmra.mxu1 %v7871_v56 }
  0x83   :  { %1447 = vmatpush.bf16.msra.mxu1 %v7161_v23  ;;  %1223 = vmatmul.bf16.vlgmr.msrb.gmra.mxu2 %v7974_v27  ;;  %v7180_v23 = vld [vmem:[%s9095_s1 + $0x510] sm:$0xff] }
  0x84   :  { %1653 = vmatpush.bf16.msra.mxu2 %v7169_v24  ;;  %1429 = vmatmul.bf16.vlgmr.msrb.gmra.mxu3 %v7871_v56  ;;  %v7154_v56 = vld [vmem:[%s9095_s1 + $0x440] sm:$0xff]  ;;  %v7188_v24 = vld [vmem:[%s9095_s1 + $0x550] sm:$0xff] }
  0x85   :  { %1666 = vmatpush.bf16.msra.mxu3 %v7177_v25  ;;  %v7196_v25 = vld [vmem:[%s9095_s1 + $0x590] sm:$0xff] }
  0x86   :  { %1435 = vmatpush.bf16.msra.mxu0 %v7152_v28  ;;  %v7179_v28 = vld [vmem:[%s9095_s1 + $0x508] sm:$0xff] }
  0x87   :  { %1448 = vmatpush.bf16.msra.mxu1 %v7160_v29  ;;  %v7187_v29 = vld [vmem:[%s9095_s1 + $0x548] sm:$0xff] }
  0x88   :  { %1654 = vmatpush.bf16.msra.mxu2 %v7168_v30  ;;  %v7195_v30 = vld [vmem:[%s9095_s1 + $0x588] sm:$0xff] }
  0x89   :  { %1667 = vmatpush.bf16.msra.mxu3 %v7176_v31  ;;  %v7203_v31 = vld [vmem:[%s9095_s1 + $0x5c8] sm:$0xff] }
  0x8a   :  { %1436 = vmatpush.bf16.msra.mxu0 %v7151_v32 }
  0x8b   :  { %1449 = vmatpush.bf16.msra.mxu1 %v7159_v33 }
  0x8c   :  { %1655 = vmatpush.bf16.msra.mxu2 %v7167_v34  ;;  %v7178_v34 = vld [vmem:[%s9095_s1 + $0x500] sm:$0xff] }
  0x8d   :  { %1668 = vmatpush.bf16.msra.mxu3 %v7175_v35  ;;  %v7186_v35 = vld [vmem:[%s9095_s1 + $0x540] sm:$0xff] }
  0x8e   :  { %1437 = vmatpush.bf16.msra.mxu0 %v7150_v36  ;;  %v52_v36 = vunpack.c.h.b16 %v8052_v52 }
  0x8f   :  { %1450 = vmatpush.bf16.msra.mxu1 %v7158_v37  ;;  %v7194_v37 = vld [vmem:[%s9095_s1 + $0x580] sm:$0xff] }
  0x90   :  { %1656 = vmatpush.bf16.msra.mxu2 %v7166_v38  ;;  %v7202_v38 = vld [vmem:[%s9095_s1 + $0x5c0] sm:$0xff] }
  0x91   :  { %1669 = vmatpush.bf16.msra.mxu3 %v7174_v39  ;;  %v7217_v39 = vld [vmem:[%s9097_s2 + $0x38] sm:$0xff] }
  0x92   :  { %1438 = vmatpush.bf16.msra.mxu0 %v7149_v40  ;;  %v7225_v40 = vld [vmem:[%s9097_s2 + $0x78] sm:$0xff] }
  0x93   :  { %1451 = vmatpush.bf16.msra.mxu1 %v7157_v41  ;;  %v7233_v41 = vld [vmem:[%s9097_s2 + $0xb8] sm:$0xff] }
  0x94   :  { %1657 = vmatpush.bf16.msra.mxu2 %v7165_v42  ;;  %v7241_v42 = vld [vmem:[%s9097_s2 + $0xf8] sm:$0xff] }
  0x95   :  { %1670 = vmatpush.bf16.msra.mxu3 %v7173_v43  ;;  %v60_v43 = vpack.c.b16 %v52_v36, %v52_v36  ;;  %v7247_v36 = vld [vmem:[%s9097_s2 + $0x128] sm:$0xff] }
  0x96   :  { %1439 = vmatpush.bf16.msra.mxu0 %v7148_v44  ;;  %v7216_v44 = vld [vmem:[%s9097_s2 + $0x30] sm:$0xff] }
  0x97   :  { %1452 = vmatpush.bf16.msra.mxu1 %v7156_v45  ;;  %v7224_v45 = vld [vmem:[%s9097_s2 + $0x70] sm:$0xff] }
  0x98   :  { %1658 = vmatpush.bf16.msra.mxu2 %v7164_v46  ;;  %v7232_v46 = vld [vmem:[%s9097_s2 + $0xb0] sm:$0xff] }
  0x99   :  { %1671 = vmatpush.bf16.msra.mxu3 %v7172_v47  ;;  %v7240_v47 = vld [vmem:[%s9097_s2 + $0xf0] sm:$0xff] }
  0x9a   :  { %1440 = vmatpush.bf16.msra.mxu0 %v7147_v50  ;;  %v7231_v50 = vld [vmem:[%s9097_s2 + $0xa8] sm:$0xff] }
  0x9b   :  { %1453 = vmatpush.bf16.msra.mxu1 %v7155_v51  ;;  %v7239_v51 = vld [vmem:[%s9097_s2 + $0xe8] sm:$0xff] }
  0x9c   :  { %1659 = vmatpush.bf16.msra.mxu2 %v7163_v53 }
  0x9d   :  { %1672 = vmatpush.bf16.msra.mxu3 %v7171_v54  ;;  %v7214_v54 = vld [vmem:[%s9097_s2 + $0x20] sm:$0xff] }
  0x9e   :  { %1441 = vmatpush.bf16.msra.mxu0 %v7146_v55  ;;  %v8115_v9 = vpop.f32.mrf.mxu0  ;;  %v7222_v55 = vld [vmem:[%s9097_s2 + $0x60] sm:$0xff] }
  0x9f   :  { %1454 = vmatpush.bf16.msra.mxu1 %v7154_v56  ;;  %v8117_v10 = vpop.f32.mrf.mxu1  ;;  %v7230_v56 = vld [vmem:[%s9097_s2 + $0xa0] sm:$0xff] }
  0xa0   :  { %1660 = vmatpush.bf16.msra.mxu2 %v7162_v58  ;;  %v284_v58 = vadd.f32 %v8117_v10, %v8115_v9  ;;  %v7236_v9 = vld [vmem:[%s9097_s2 + $0xd0] sm:$0xff] }
  0xa1   :  { %1673 = vmatpush.bf16.msra.mxu3 %v7170_v59  ;;  %1442 = vmatmul.bf16.vlgmr.msra.gmra.mxu0 %v7974_v27 }
  0xa2   :  { %1679 = vmatpush.bf16.msrb.mxu0 %v7185_v60  ;;  %1455 = vmatmul.bf16.vlgmr.msra.gmra.mxu1 %v8085_v0  ;;  %v7213_v60 = vld [vmem:[%s9097_s2 + $0x18] sm:$0xff] }
  0xa3   :  { %1885 = vmatpush.bf16.msrb.mxu1 %v7193_v61  ;;  %1661 = vmatmul.bf16.vlgmr.msra.gmra.mxu2 %v7974_v27  ;;  %v7204_v27 = vld [vmem:[%s9095_s1 + $0x5d0] sm:$0xff]  ;;  %v7221_v61 = vld [vmem:[%s9097_s2 + $0x58] sm:$0xff] }
  0xa4   :  { %1898 = vmatpush.bf16.msrb.mxu2 %v7201_v62  ;;  %1674 = vmatmul.bf16.vlgmr.msra.gmra.mxu3 %v8085_v0  ;;  %v7229_v62 = vld [vmem:[%s9097_s2 + $0x98] sm:$0xff] }
  0xa5   :  { %1911 = vmatpush.bf16.msrb.mxu3 %v7209_v63  ;;  %v7237_v63 = vld [vmem:[%s9097_s2 + $0xd8] sm:$0xff] }
  0xa6   :  { %1680 = vmatpush.bf16.msrb.mxu0 %v7184_v1  ;;  %v8143_v19 = vpop.f32.mrf.mxu2  ;;  %v272_v21 = vpop.f32.mrf.mxu0 }
  0xa7   :  { %1886 = vmatpush.bf16.msrb.mxu1 %v7192_v2  ;;  %v8145_v20 = vpop.f32.mrf.mxu3  ;;  %v285_v22 = vpop.f32.mrf.mxu1  ;;  %v7226_v21 = vld [vmem:[%s9097_s2 + $0x80] sm:$0xff] }
  0xa8   :  { %1899 = vmatpush.bf16.msrb.mxu2 %v7200_v3  ;;  %v7234_v22 = vld [vmem:[%s9097_s2 + $0xc0] sm:$0xff] }
  0xa9   :  { %1912 = vmatpush.bf16.msrb.mxu3 %v7208_v4 }
  0xaa   :  { %1681 = vmatpush.bf16.msrb.mxu0 %v7183_v5 }
  0xab   :  { %1887 = vmatpush.bf16.msrb.mxu1 %v7191_v6  ;;  %v7212_v6 = vld [vmem:[%s9097_s2 + $0x10] sm:$0xff] }
  0xac   :  { %1900 = vmatpush.bf16.msrb.mxu2 %v7199_v7  ;;  %v7220_v7 = vld [vmem:[%s9097_s2 + $0x50] sm:$0xff] }
  0xad   :  { %1913 = vmatpush.bf16.msrb.mxu3 %v7207_v8  ;;  %v7228_v8 = vld [vmem:[%s9097_s2 + $0x90] sm:$0xff] }
  0xae   :  { %1682 = vmatpush.bf16.msrb.mxu0 %v7182_v11  ;;  %v298_v32 = vpop.f32.mrf.mxu2 }
  0xaf   :  { %1888 = vmatpush.bf16.msrb.mxu1 %v7190_v12  ;;  %v504_v33 = vpop.f32.mrf.mxu3  ;;  %v7211_v12 = vld [vmem:[%s9097_s2 + $0x8] sm:$0xff]  ;;  %v7256_v32 = vld [vmem:[%s9097_s2 + $0x170] sm:$0xff] }
  0xb0   :  { %1901 = vmatpush.bf16.msrb.mxu2 %v7198_v13  ;;  %v7219_v13 = vld [vmem:[%s9097_s2 + $0x48] sm:$0xff] }
  0xb1   :  { %1914 = vmatpush.bf16.msrb.mxu3 %v7206_v14  ;;  %v7227_v14 = vld [vmem:[%s9097_s2 + $0x88] sm:$0xff] }
  0xb2   :  { %1683 = vmatpush.bf16.msrb.mxu0 %v7181_v15  ;;  %v7235_v15 = vld [vmem:[%s9097_s2 + $0xc8] sm:$0xff] }
  0xb3   :  { %1889 = vmatpush.bf16.msrb.mxu1 %v7189_v16 }
  0xb4   :  { %1902 = vmatpush.bf16.msrb.mxu2 %v7197_v17 }
  0xb5   :  { %1915 = vmatpush.bf16.msrb.mxu3 %v7205_v18 }
  0xb6   :  { %1684 = vmatpush.bf16.msrb.mxu0 %v7180_v23 }
  0xb7   :  { %1890 = vmatpush.bf16.msrb.mxu1 %v7188_v24  ;;  %v7249_v24 = vld [vmem:[%s9097_s2 + $0x138] sm:$0xff] }
  0xb8   :  { %1903 = vmatpush.bf16.msrb.mxu2 %v7196_v25  ;;  %v7257_v25 = vld [vmem:[%s9097_s2 + $0x178] sm:$0xff] }
  0xb9   :  { %1916 = vmatpush.bf16.msrb.mxu3 %v7204_v27 }
  0xba   :  { %1685 = vmatpush.bf16.msrb.mxu0 %v7179_v28  ;;  %v7265_v28 = vld [vmem:[%s9097_s2 + $0x1b8] sm:$0xff] }
  0xbb   :  { %1891 = vmatpush.bf16.msrb.mxu1 %v7187_v29  ;;  %v7273_v29 = vld [vmem:[%s9097_s2 + $0x1f8] sm:$0xff] }
  0xbc   :  { %1904 = vmatpush.bf16.msrb.mxu2 %v7195_v30 }
  0xbd   :  { %1917 = vmatpush.bf16.msrb.mxu3 %v7203_v31  ;;  %v7248_v31 = vld [vmem:[%s9097_s2 + $0x130] sm:$0xff] }
  0xbe   :  { %1686 = vmatpush.bf16.msrb.mxu0 %v7178_v34  ;;  %v515_v52 = vpop.f32.mrf.mxu0  ;;  %v7264_v34 = vld [vmem:[%s9097_s2 + $0x1b0] sm:$0xff] }
  0xbf   :  { %1892 = vmatpush.bf16.msrb.mxu1 %v7186_v35  ;;  %v528_v53 = vpop.f32.mrf.mxu1  ;;  %v516_v59 = vadd.f32 %v515_v52, %v8145_v20  ;;  %v7218_v20 = vld [vmem:[%s9097_s2 + $0x40] sm:$0xff]  ;;  %v7272_v35 = vld [vmem:[%s9097_s2 + $0x1f0] sm:$0xff] }
  0xc0   :  { %1905 = vmatpush.bf16.msrb.mxu2 %v7194_v37  ;;  %v7255_v37 = vld [vmem:[%s9097_s2 + $0x168] sm:$0xff] }
  0xc1   :  { %1918 = vmatpush.bf16.msrb.mxu3 %v7202_v38  ;;  %1687 = vmatmul.bf16.vlgmr.msrb.gmra.mxu0 %v60_v43  ;;  %v529_v1 = vadd.f32 %v528_v53, %v516_v59  ;;  %v7263_v38 = vld [vmem:[%s9097_s2 + $0x1a8] sm:$0xff] }
  0xc2   :  { %2156 = vmatpush.bf16.msra.mxu0 %v7217_v39  ;;  %1893 = vmatmul.bf16.vlgmr.msrb.gmra.mxu1 %v8085_v0  ;;  %v297_v0 = vadd.f32 %v8143_v19, %v284_v58  ;;  %v7210_v19 = vld [vmem:[%s9097_s2] sm:$0xff]  ;;  %v7271_v39 = vld [vmem:[%s9097_s2 + $0x1e8] sm:$0xff] }
  0xc3   :  { %2169 = vmatpush.bf16.msra.mxu1 %v7225_v40  ;;  %1906 = vmatmul.bf16.vlgmr.msrb.gmra.mxu2 %v60_v43  ;;  %v1925_v11 = vmax.f32 %v529_v1, 0.0  ;;  %v7246_v40 = vld [vmem:[%s9097_s2 + $0x120] sm:$0xff]  ;;  %v7243_v1 = vld [vmem:[%s9097_s2 + $0x108] sm:$0xff] }
  0xc4   :  { %2182 = vmatpush.bf16.msra.mxu2 %v7233_v41  ;;  %1919 = vmatmul.bf16.vlgmr.msrb.gmra.mxu3 %v7490_v26  ;;  %v1924_v10 = vmax.f32 %v297_v0, 0.0  ;;  %v7254_v41 = vld [vmem:[%s9097_s2 + $0x160] sm:$0xff] }
  0xc5   :  { %2388 = vmatpush.bf16.msra.mxu3 %v7241_v42 }
  0xc6   :  { %2157 = vmatpush.bf16.msra.mxu0 %v7216_v44  ;;  %v8250_v2 = vpop.f32.mrf.mxu2  ;;  %v517_v4 = vpop.f32.mrf.mxu0  ;;  %v1932_v16 = vpack.c.bf16 %v1925_v11, %v1924_v10  ;;  %v7262_v44 = vld [vmem:[%s9097_s2 + $0x1a0] sm:$0xff] }
  0xc7   :  { %2170 = vmatpush.bf16.msra.mxu1 %v7224_v45  ;;  %v8252_v3 = vpop.f32.mrf.mxu3  ;;  %v530_v5 = vpop.f32.mrf.mxu1  ;;  %v7270_v45 = vld [vmem:[%s9097_s2 + $0x1e0] sm:$0xff]  ;;  %v7267_v4 = vld [vmem:[%s9097_s2 + $0x1c8] sm:$0xff] }
  0xc8   :  { %2183 = vmatpush.bf16.msra.mxu2 %v7232_v46  ;;  %v1940_v23 = vunpack.c.l.b16 %v1932_v16  ;;  %v1941_v27 = vunpack.c.h.b16 %v1932_v16  ;;  %v748_v46 = vadd.f32 %v8252_v3, %v8250_v2  ;;  %v7251_v2 = vld [vmem:[%s9097_s2 + $0x148] sm:$0xff]  ;;  %v7258_v10 = vld [vmem:[%s9097_s2 + $0x180] sm:$0xff] }
  0xc9   :  { %2389 = vmatpush.bf16.msra.mxu3 %v7240_v47  ;;  %v7245_v47 = vld [vmem:[%s9097_s2 + $0x118] sm:$0xff]  ;;  %v7259_v3 = vld [vmem:[%s9097_s2 + $0x188] sm:$0xff]  ;;  %v7266_v11 = vld [vmem:[%s9097_s2 + $0x1c0] sm:$0xff] }
  0xca   :  { %2158 = vmatpush.bf16.msra.mxu0 %v7215_v48  ;;  %v1948_v30 = vpack.c.b16 %v1940_v23, %v1940_v23  ;;  %v8308_v33 = vpack.c.b16 %v1941_v27, %v1941_v27  ;;  %v7253_v48 = vld [vmem:[%s9097_s2 + $0x158] sm:$0xff]  ;;  %v7295_v23 = vld [vmem:[%s9097_s2 + $0x2a8] sm:$0xff] }
  0xcb   :  { %2171 = vmatpush.bf16.msra.mxu1 %v7223_v49  ;;  %v7261_v49 = vld [vmem:[%s9097_s2 + $0x198] sm:$0xff] }
  0xcc   :  { %2184 = vmatpush.bf16.msra.mxu2 %v7231_v50  ;;  %v7269_v50 = vld [vmem:[%s9097_s2 + $0x1d8] sm:$0xff] }
  0xcd   :  { %2390 = vmatpush.bf16.msra.mxu3 %v7239_v51 }
  0xce   :  { %2159 = vmatpush.bf16.msra.mxu0 %v7214_v54  ;;  %v736_v17 = vpop.f32.mrf.mxu2 }
  0xcf   :  { %2172 = vmatpush.bf16.msra.mxu1 %v7222_v55  ;;  %v749_v18 = vpop.f32.mrf.mxu3  ;;  %v7280_v17 = vld [vmem:[%s9097_s2 + $0x230] sm:$0xff] }
  0xd0   :  { %2185 = vmatpush.bf16.msra.mxu2 %v7230_v56  ;;  %v7244_v56 = vld [vmem:[%s9097_s2 + $0x110] sm:$0xff] }
  0xd1   :  { %2391 = vmatpush.bf16.msra.mxu3 %v7238_v57  ;;  %v7252_v57 = vld [vmem:[%s9097_s2 + $0x150] sm:$0xff] }
  0xd2   :  { %2160 = vmatpush.bf16.msra.mxu0 %v7213_v60  ;;  %v7260_v60 = vld [vmem:[%s9097_s2 + $0x190] sm:$0xff] }
  0xd3   :  { %2173 = vmatpush.bf16.msra.mxu1 %v7221_v61  ;;  %v7268_v61 = vld [vmem:[%s9097_s2 + $0x1d0] sm:$0xff] }
  0xd4   :  { %2186 = vmatpush.bf16.msra.mxu2 %v7229_v62  ;;  %v7288_v18 = vld [vmem:[%s9097_s2 + $0x270] sm:$0xff] }
  0xd5   :  { %2392 = vmatpush.bf16.msra.mxu3 %v7237_v63 }
  0xd6   :  { %2161 = vmatpush.bf16.msra.mxu0 %v7212_v6 }
  0xd7   :  { %2174 = vmatpush.bf16.msra.mxu1 %v7220_v7 }
  0xd8   :  { %2187 = vmatpush.bf16.msra.mxu2 %v7228_v8  ;;  %v7242_v8 = vld [vmem:[%s9097_s2 + $0x100] sm:$0xff] }
  0xd9   :  { %2393 = vmatpush.bf16.msra.mxu3 %v7236_v9  ;;  %v7250_v9 = vld [vmem:[%s9097_s2 + $0x140] sm:$0xff] }
  0xda   :  { %2162 = vmatpush.bf16.msra.mxu0 %v7211_v12  ;;  %v7281_v12 = vld [vmem:[%s9097_s2 + $0x238] sm:$0xff] }
  0xdb   :  { %2175 = vmatpush.bf16.msra.mxu1 %v7219_v13  ;;  %v7289_v13 = vld [vmem:[%s9097_s2 + $0x278] sm:$0xff] }
  0xdc   :  { %2188 = vmatpush.bf16.msra.mxu2 %v7227_v14  ;;  %v7297_v14 = vld [vmem:[%s9097_s2 + $0x2b8] sm:$0xff] }
  0xdd   :  { %2394 = vmatpush.bf16.msra.mxu3 %v7235_v15  ;;  %v7305_v15 = vld [vmem:[%s9097_s2 + $0x2f8] sm:$0xff] }
  0xde   :  { %2163 = vmatpush.bf16.msra.mxu0 %v7210_v19  ;;  %v760_v42 = vpop.f32.mrf.mxu0  ;;  %v7296_v19 = vld [vmem:[%s9097_s2 + $0x2b0] sm:$0xff] }
  0xdf   :  { %2176 = vmatpush.bf16.msra.mxu1 %v7218_v20  ;;  %v966_v43 = vpop.f32.mrf.mxu1  ;;  %v761_v53 = vadd.f32 %v760_v42, %v748_v46  ;;  %v7304_v20 = vld [vmem:[%s9097_s2 + $0x2f0] sm:$0xff]  ;;  %v7291_v46 = vld [vmem:[%s9097_s2 + $0x288] sm:$0xff] }
  0xe0   :  { %2189 = vmatpush.bf16.msra.mxu2 %v7226_v21  ;;  %v7279_v21 = vld [vmem:[%s9097_s2 + $0x228] sm:$0xff]  ;;  %v7292_v42 = vld [vmem:[%s9097_s2 + $0x290] sm:$0xff] }
  0xe1   :  { %2395 = vmatpush.bf16.msra.mxu3 %v7234_v22  ;;  %2164 = vmatmul.bf16.vlgmr.msra.gmra.mxu0 %v7490_v26  ;;  %v1926_v62 = vmax.f32 %v761_v53, 0.0  ;;  %v7287_v22 = vld [vmem:[%s9097_s2 + $0x268] sm:$0xff]  ;;  %v7298_v53 = vld [vmem:[%s9097_s2 + $0x2c0] sm:$0xff] }
  0xe2   :  { %2401 = vmatpush.bf16.msrb.mxu0 %v7249_v24  ;;  %2177 = vmatmul.bf16.vlgmr.msra.gmra.mxu1 %v1948_v30  ;;  %v7303_v24 = vld [vmem:[%s9097_s2 + $0x2e8] sm:$0xff] }
  0xe3   :  { %2414 = vmatpush.bf16.msrb.mxu1 %v7257_v25  ;;  %2190 = vmatmul.bf16.vlgmr.msra.gmra.mxu2 %v8308_v33 }
  0xe4   :  { %2620 = vmatpush.bf16.msrb.mxu2 %v7265_v28  ;;  %2396 = vmatmul.bf16.vlgmr.msra.gmra.mxu3 %v1948_v30  ;;  %v7278_v28 = vld [vmem:[%s9097_s2 + $0x220] sm:$0xff] }
  0xe5   :  { %2633 = vmatpush.bf16.msrb.mxu3 %v7273_v29  ;;  %v7286_v29 = vld [vmem:[%s9097_s2 + $0x260] sm:$0xff] }
  0xe6   :  { %2402 = vmatpush.bf16.msrb.mxu0 %v7248_v31  ;;  %v979_v51 = vpop.f32.mrf.mxu2  ;;  %v762_v58 = vpop.f32.mrf.mxu0  ;;  %v7294_v30 = vld [vmem:[%s9097_s2 + $0x2a0] sm:$0xff] }
  0xe7   :  { %2415 = vmatpush.bf16.msrb.mxu1 %v7256_v32  ;;  %v992_v52 = vpop.f32.mrf.mxu3  ;;  %v980_v54 = vadd.f32 %v979_v51, %v966_v43  ;;  %v968_v59 = vpop.f32.mrf.mxu1  ;;  %v7302_v31 = vld [vmem:[%s9097_s2 + $0x2e0] sm:$0xff]  ;;  %v7277_v32 = vld [vmem:[%s9097_s2 + $0x218] sm:$0xff]  ;;  %v7300_v43 = vld [vmem:[%s9097_s2 + $0x2d0] sm:$0xff] }
  0xe8   :  { %2621 = vmatpush.bf16.msrb.mxu2 %v7264_v34  ;;  %v7293_v34 = vld [vmem:[%s9097_s2 + $0x298] sm:$0xff]  ;;  %v7282_v51 = vld [vmem:[%s9097_s2 + $0x240] sm:$0xff] }
  0xe9   :  { %2634 = vmatpush.bf16.msrb.mxu3 %v7272_v35  ;;  %v993_v55 = vadd.f32 %v992_v52, %v980_v54  ;;  %v7301_v35 = vld [vmem:[%s9097_s2 + $0x2d8] sm:$0xff]  ;;  %v7290_v52 = vld [vmem:[%s9097_s2 + $0x280] sm:$0xff] }
  0xea   :  { %2403 = vmatpush.bf16.msrb.mxu0 %v7247_v36  ;;  %v7337_v58 = vld [vmem:[%s9097_s2 + $0x3f8] sm:$0xff] }
  0xeb   :  { %2416 = vmatpush.bf16.msrb.mxu1 %v7255_v37  ;;  %v1927_v63 = vmax.f32 %v993_v55, 0.0  ;;  %v7313_v55 = vld [vmem:[%s9097_s2 + $0x338] sm:$0xff] }
  0xec   :  { %2622 = vmatpush.bf16.msrb.mxu2 %v7263_v38 }
  0xed   :  { %2635 = vmatpush.bf16.msrb.mxu3 %v7271_v39  ;;  %v8368_v0 = vpack.c.bf16 %v1927_v63, %v1926_v62  ;;  %v7328_v62 = vld [vmem:[%s9097_s2 + $0x3b0] sm:$0xff] }
  0xee   :  { %2404 = vmatpush.bf16.msrb.mxu0 %v7246_v40  ;;  %v981_v5 = vpop.f32.mrf.mxu2  ;;  %v7276_v40 = vld [vmem:[%s9097_s2 + $0x210] sm:$0xff] }
  0xef   :  { %2417 = vmatpush.bf16.msrb.mxu1 %v7254_v41  ;;  %v994_v6 = vpop.f32.mrf.mxu3  ;;  %v1942_v7 = vunpack.c.l.b16 %v8368_v0  ;;  %v7284_v41 = vld [vmem:[%s9097_s2 + $0x250] sm:$0xff]  ;;  %v1943_v54 = vunpack.c.h.b16 %v8368_v0 }
  0xf0   :  { %2623 = vmatpush.bf16.msrb.mxu2 %v7262_v44  ;;  %v7275_v44 = vld [vmem:[%s9097_s2 + $0x208] sm:$0xff]  ;;  %v7336_v63 = vld [vmem:[%s9097_s2 + $0x3f0] sm:$0xff] }
  0xf1   :  { %2636 = vmatpush.bf16.msrb.mxu3 %v7270_v45  ;;  %v8407_v16 = vpack.c.b16 %v1942_v7, %v1942_v7  ;;  %v7283_v45 = vld [vmem:[%s9097_s2 + $0x248] sm:$0xff]  ;;  %v8516_v59 = vpack.c.b16 %v1943_v54, %v1943_v54 }
  0xf2   :  { %2405 = vmatpush.bf16.msrb.mxu0 %v7245_v47  ;;  %v7299_v47 = vld [vmem:[%s9097_s2 + $0x2c8] sm:$0xff] }
  0xf3   :  { %2418 = vmatpush.bf16.msrb.mxu1 %v7253_v48  ;;  %v7359_v54 = vld [vmem:[%s9097_s2 + $0x4a8] sm:$0xff] }
  0xf4   :  { %2624 = vmatpush.bf16.msrb.mxu2 %v7261_v49 }
  0xf5   :  { %2637 = vmatpush.bf16.msrb.mxu3 %v7269_v50  ;;  %v7274_v50 = vld [vmem:[%s9097_s2 + $0x200] sm:$0xff] }
  0xf6   :  { %2406 = vmatpush.bf16.msrb.mxu0 %v7244_v56  ;;  %v7321_v56 = vld [vmem:[%s9097_s2 + $0x378] sm:$0xff] }
  0xf7   :  { %2419 = vmatpush.bf16.msrb.mxu1 %v7252_v57  ;;  %v7329_v57 = vld [vmem:[%s9097_s2 + $0x3b8] sm:$0xff] }
  0xf8   :  { %2625 = vmatpush.bf16.msrb.mxu2 %v7260_v60  ;;  %v7312_v60 = vld [vmem:[%s9097_s2 + $0x330] sm:$0xff] }
  0xf9   :  { %2638 = vmatpush.bf16.msrb.mxu3 %v7268_v61  ;;  %v7320_v61 = vld [vmem:[%s9097_s2 + $0x370] sm:$0xff] }
  0xfa   :  { %2407 = vmatpush.bf16.msrb.mxu0 %v7243_v1  ;;  %v7311_v1 = vld [vmem:[%s9097_s2 + $0x328] sm:$0xff] }
  0xfb   :  { %2420 = vmatpush.bf16.msrb.mxu1 %v7251_v2  ;;  %v7319_v2 = vld [vmem:[%s9097_s2 + $0x368] sm:$0xff] }
  0xfc   :  { %2626 = vmatpush.bf16.msrb.mxu2 %v7259_v3  ;;  %v7327_v3 = vld [vmem:[%s9097_s2 + $0x3a8] sm:$0xff] }
  0xfd   :  { %2639 = vmatpush.bf16.msrb.mxu3 %v7267_v4  ;;  %v7335_v4 = vld [vmem:[%s9097_s2 + $0x3e8] sm:$0xff] }
  0xfe   :  { %2408 = vmatpush.bf16.msrb.mxu0 %v7242_v8  ;;  %v8437_v25 = vpop.f32.mrf.mxu0 }
  0xff   :  { %2421 = vmatpush.bf16.msrb.mxu1 %v7250_v9  ;;  %v8439_v27 = vpop.f32.mrf.mxu1  ;;  %v7310_v9 = vld [vmem:[%s9097_s2 + $0x320] sm:$0xff] }
 0x100   :  { %2627 = vmatpush.bf16.msrb.mxu2 %v7258_v10  ;;  %v1212_v0 = vadd.f32 %v8439_v27, %v8437_v25  ;;  %v7318_v10 = vld [vmem:[%s9097_s2 + $0x360] sm:$0xff]  ;;  %v7308_v27 = vld [vmem:[%s9097_s2 + $0x310] sm:$0xff] }
 0x101   :  { %2640 = vmatpush.bf16.msrb.mxu3 %v7266_v11  ;;  %2409 = vmatmul.bf16.vlgmr.msrb.gmra.mxu0 %v8308_v33  ;;  %v7326_v11 = vld [vmem:[%s9097_s2 + $0x3a0] sm:$0xff] }
 0x102   :  { %2646 = vmatpush.bf16.msra.mxu0 %v7281_v12  ;;  %2422 = vmatmul.bf16.vlgmr.msrb.gmra.mxu1 %v8407_v16  ;;  %v7334_v12 = vld [vmem:[%s9097_s2 + $0x3e0] sm:$0xff] }
 0x103   :  { %2852 = vmatpush.bf16.msra.mxu1 %v7289_v13  ;;  %2628 = vmatmul.bf16.vlgmr.msrb.gmra.mxu2 %v8308_v33  ;;  %v7285_v33 = vld [vmem:[%s9097_s2 + $0x258] sm:$0xff] }
 0x104   :  { %2865 = vmatpush.bf16.msra.mxu2 %v7297_v14  ;;  %2641 = vmatmul.bf16.vlgmr.msrb.gmra.mxu3 %v8407_v16 }
 0x105   :  { %2878 = vmatpush.bf16.msra.mxu3 %v7305_v15 }
 0x106   :  { %2647 = vmatpush.bf16.msra.mxu0 %v7280_v17  ;;  %v1224_v36 = vpop.f32.mrf.mxu2  ;;  %v1200_v38 = vpop.f32.mrf.mxu0  ;;  %v7317_v17 = vld [vmem:[%s9097_s2 + $0x358] sm:$0xff] }
 0x107   :  { %2853 = vmatpush.bf16.msra.mxu1 %v7288_v18  ;;  %v8465_v37 = vpop.f32.mrf.mxu3  ;;  %v1213_v39 = vpop.f32.mrf.mxu1  ;;  %v1225_v7 = vadd.f32 %v1224_v36, %v1212_v0  ;;  %v7325_v18 = vld [vmem:[%s9097_s2 + $0x398] sm:$0xff]  ;;  %v7306_v38 = vld [vmem:[%s9097_s2 + $0x300] sm:$0xff] }
 0x108   :  { %2866 = vmatpush.bf16.msra.mxu2 %v7296_v19  ;;  %v7333_v19 = vld [vmem:[%s9097_s2 + $0x3d8] sm:$0xff]  ;;  %v7314_v39 = vld [vmem:[%s9097_s2 + $0x340] sm:$0xff] }
 0x109   :  { %2879 = vmatpush.bf16.msra.mxu3 %v7304_v20  ;;  %v1928_v14 = vmax.f32 %v1225_v7, 0.0  ;;  %v7349_v0 = vld [vmem:[%s9097_s2 + $0x458] sm:$0xff] }
 0x10a   :  { %2648 = vmatpush.bf16.msra.mxu0 %v7279_v21 }
 0x10b   :  { %2854 = vmatpush.bf16.msra.mxu1 %v7287_v22 }
 0x10c   :  { %2867 = vmatpush.bf16.msra.mxu2 %v7295_v23 }
 0x10d   :  { %2880 = vmatpush.bf16.msra.mxu3 %v7303_v24 }
 0x10e   :  { %2649 = vmatpush.bf16.msra.mxu0 %v7278_v28  ;;  %v1226_v48 = vpop.f32.mrf.mxu2  ;;  %v7316_v28 = vld [vmem:[%s9097_s2 + $0x350] sm:$0xff] }
 0x10f   :  { %2855 = vmatpush.bf16.msra.mxu1 %v7286_v29  ;;  %v1432_v49 = vpop.f32.mrf.mxu3  ;;  %v7324_v29 = vld [vmem:[%s9097_s2 + $0x390] sm:$0xff] }
 0x110   :  { %2868 = vmatpush.bf16.msra.mxu2 %v7294_v30  ;;  %v7332_v30 = vld [vmem:[%s9097_s2 + $0x3d0] sm:$0xff] }
 0x111   :  { %2881 = vmatpush.bf16.msra.mxu3 %v7302_v31  ;;  %v7352_v48 = vld [vmem:[%s9097_s2 + $0x470] sm:$0xff] }
 0x112   :  { %2650 = vmatpush.bf16.msra.mxu0 %v7277_v32  ;;  %v7307_v32 = vld [vmem:[%s9097_s2 + $0x308] sm:$0xff] }
 0x113   :  { %2856 = vmatpush.bf16.msra.mxu1 %v7285_v33  ;;  %v7315_v33 = vld [vmem:[%s9097_s2 + $0x348] sm:$0xff] }
 0x114   :  { %2869 = vmatpush.bf16.msra.mxu2 %v7293_v34  ;;  %v7323_v34 = vld [vmem:[%s9097_s2 + $0x388] sm:$0xff] }
 0x115   :  { %2882 = vmatpush.bf16.msra.mxu3 %v7301_v35  ;;  %v7331_v35 = vld [vmem:[%s9097_s2 + $0x3c8] sm:$0xff] }
 0x116   :  { %2651 = vmatpush.bf16.msra.mxu0 %v7276_v40  ;;  %v7322_v40 = vld [vmem:[%s9097_s2 + $0x380] sm:$0xff] }
 0x117   :  { %2857 = vmatpush.bf16.msra.mxu1 %v7284_v41  ;;  %v7330_v41 = vld [vmem:[%s9097_s2 + $0x3c0] sm:$0xff] }
 0x118   :  { %2870 = vmatpush.bf16.msra.mxu2 %v7292_v42  ;;  %v7345_v42 = vld [vmem:[%s9097_s2 + $0x438] sm:$0xff] }
 0x119   :  { %2883 = vmatpush.bf16.msra.mxu3 %v7300_v43  ;;  %v7353_v43 = vld [vmem:[%s9097_s2 + $0x478] sm:$0xff] }
 0x11a   :  { %2652 = vmatpush.bf16.msra.mxu0 %v7275_v44 }
 0x11b   :  { %2858 = vmatpush.bf16.msra.mxu1 %v7283_v45  ;;  %v7361_v45 = vld [vmem:[%s9097_s2 + $0x4b8] sm:$0xff] }
 0x11c   :  { %2871 = vmatpush.bf16.msra.mxu2 %v7291_v46  ;;  %v7369_v46 = vld [vmem:[%s9097_s2 + $0x4f8] sm:$0xff] }
 0x11d   :  { %2884 = vmatpush.bf16.msra.mxu3 %v7299_v47  ;;  %v7344_v47 = vld [vmem:[%s9097_s2 + $0x430] sm:$0xff] }
 0x11e   :  { %2653 = vmatpush.bf16.msra.mxu0 %v7274_v50  ;;  %v1443_v5 = vpop.f32.mrf.mxu0  ;;  %v7360_v50 = vld [vmem:[%s9097_s2 + $0x4b0] sm:$0xff] }
 0x11f   :  { %2859 = vmatpush.bf16.msra.mxu1 %v7282_v51  ;;  %v1456_v6 = vpop.f32.mrf.mxu1  ;;  %v1444_v8 = vadd.f32 %v1443_v5, %v8465_v37  ;;  %v7368_v51 = vld [vmem:[%s9097_s2 + $0x4f0] sm:$0xff] }
 0x120   :  { %2872 = vmatpush.bf16.msra.mxu2 %v7290_v52  ;;  %v7343_v52 = vld [vmem:[%s9097_s2 + $0x428] sm:$0xff] }
 0x121   :  { %2885 = vmatpush.bf16.msra.mxu3 %v7298_v53  ;;  %2654 = vmatmul.bf16.vlgmr.msra.gmra.mxu0 %v8516_v59  ;;  %v1457_v13 = vadd.f32 %v1456_v6, %v1444_v8  ;;  %v7351_v53 = vld [vmem:[%s9097_s2 + $0x468] sm:$0xff]  ;;  %v7340_v8 = vld [vmem:[%s9097_s2 + $0x410] sm:$0xff] }
 0x122   :  { %3084 = vmatpush.bf16.msrb.mxu0 %v7313_v55  ;;  %2860 = vmatmul.bf16.vlgmr.msra.gmra.mxu1 %v8407_v16  ;;  %v7309_v16 = vld [vmem:[%s9097_s2 + $0x318] sm:$0xff]  ;;  %v7367_v55 = vld [vmem:[%s9097_s2 + $0x4e8] sm:$0xff] }
 0x123   :  { %3097 = vmatpush.bf16.msrb.mxu1 %v7321_v56  ;;  %2873 = vmatmul.bf16.vlgmr.msra.gmra.mxu2 %v8516_v59  ;;  %v1929_v15 = vmax.f32 %v1457_v13, 0.0  ;;  %v7342_v56 = vld [vmem:[%s9097_s2 + $0x420] sm:$0xff]  ;;  %v7364_v13 = vld [vmem:[%s9097_s2 + $0x4d0] sm:$0xff] }
 0x124   :  { %3110 = vmatpush.bf16.msrb.mxu2 %v7329_v57  ;;  %v7350_v57 = vld [vmem:[%s9097_s2 + $0x460] sm:$0xff] }
 0x125   :  { %3316 = vmatpush.bf16.msrb.mxu3 %v7337_v58  ;;  %v1934_v20 = vpack.c.bf16 %v1929_v15, %v1928_v14 }
 0x126   :  { %3085 = vmatpush.bf16.msrb.mxu0 %v7312_v60  ;;  %v8572_v21 = vpop.f32.mrf.mxu2  ;;  %v1445_v23 = vpop.f32.mrf.mxu0  ;;  %v7358_v60 = vld [vmem:[%s9097_s2 + $0x4a0] sm:$0xff] }
 0x127   :  { %3098 = vmatpush.bf16.msrb.mxu1 %v7320_v61  ;;  %v8574_v22 = vpop.f32.mrf.mxu3  ;;  %v1458_v24 = vpop.f32.mrf.mxu1  ;;  %v1944_v25 = vunpack.c.l.b16 %v1934_v20  ;;  %v1945_v44 = vunpack.c.h.b16 %v1934_v20  ;;  %v7366_v61 = vld [vmem:[%s9097_s2 + $0x4e0] sm:$0xff]  ;;  %v7363_v20 = vld [vmem:[%s9097_s2 + $0x4c8] sm:$0xff] }
 0x128   :  { %3111 = vmatpush.bf16.msrb.mxu2 %v7328_v62  ;;  %v1676_v62 = vadd.f32 %v8574_v22, %v8572_v21  ;;  %v7338_v24 = vld [vmem:[%s9097_s2 + $0x400] sm:$0xff] }
 0x129   :  { %3317 = vmatpush.bf16.msrb.mxu3 %v7336_v63  ;;  %v1952_v31 = vpack.c.b16 %v1944_v25, %v1944_v25  ;;  %v8630_v49 = vpack.c.b16 %v1945_v44, %v1945_v44  ;;  %v7341_v63 = vld [vmem:[%s9097_s2 + $0x418] sm:$0xff]  ;;  %v7346_v25 = vld [vmem:[%s9097_s2 + $0x440] sm:$0xff] }
 0x12a   :  { %3086 = vmatpush.bf16.msrb.mxu0 %v7311_v1  ;;  %v7357_v1 = vld [vmem:[%s9097_s2 + $0x498] sm:$0xff] }
 0x12b   :  { %3099 = vmatpush.bf16.msrb.mxu1 %v7319_v2  ;;  %2886 = vmatmul.bf16.vlgmr.msra.gmra.mxu3 %v1952_v31  ;;  %v7365_v2 = vld [vmem:[%s9097_s2 + $0x4d8] sm:$0xff] }
 0x12c   :  { %3112 = vmatpush.bf16.msrb.mxu2 %v7327_v3 }
 0x12d   :  { %3318 = vmatpush.bf16.msrb.mxu3 %v7335_v4 }
 0x12e   :  { %3087 = vmatpush.bf16.msrb.mxu0 %v7310_v9  ;;  %v1664_v36 = vpop.f32.mrf.mxu2  ;;  %v7348_v9 = vld [vmem:[%s9097_s2 + $0x450] sm:$0xff] }
 0x12f   :  { %3100 = vmatpush.bf16.msrb.mxu1 %v7318_v10  ;;  %v1677_v37 = vpop.f32.mrf.mxu3  ;;  %v7392_v36 = vld [vmem:[%s9097_s2 + $0x5b0] sm:$0xff] }
 0x130   :  { %3113 = vmatpush.bf16.msrb.mxu2 %v7326_v11  ;;  %v7400_v37 = vld [vmem:[%s9097_s2 + $0x5f0] sm:$0xff] }
 0x131   :  { %3319 = vmatpush.bf16.msrb.mxu3 %v7334_v12  ;;  %v7356_v12 = vld [vmem:[%s9097_s2 + $0x490] sm:$0xff] }
 0x132   :  { %3088 = vmatpush.bf16.msrb.mxu0 %v7309_v16 }
 0x133   :  { %3101 = vmatpush.bf16.msrb.mxu1 %v7317_v17  ;;  %v7339_v17 = vld [vmem:[%s9097_s2 + $0x408] sm:$0xff] }
 0x134   :  { %3114 = vmatpush.bf16.msrb.mxu2 %v7325_v18  ;;  %v7347_v18 = vld [vmem:[%s9097_s2 + $0x448] sm:$0xff] }
 0x135   :  { %3320 = vmatpush.bf16.msrb.mxu3 %v7333_v19  ;;  %v7355_v19 = vld [vmem:[%s9097_s2 + $0x488] sm:$0xff] }
 0x136   :  { %3089 = vmatpush.bf16.msrb.mxu0 %v7308_v27  ;;  %v7354_v27 = vld [vmem:[%s9097_s2 + $0x480] sm:$0xff] }
 0x137   :  { %3102 = vmatpush.bf16.msrb.mxu1 %v7316_v28  ;;  %v7362_v28 = vld [vmem:[%s9097_s2 + $0x4c0] sm:$0xff] }
 0x138   :  { %3115 = vmatpush.bf16.msrb.mxu2 %v7324_v29  ;;  %v7377_v29 = vld [vmem:[%s9097_s2 + $0x538] sm:$0xff] }
 0x139   :  { %3321 = vmatpush.bf16.msrb.mxu3 %v7332_v30  ;;  %v7385_v30 = vld [vmem:[%s9097_s2 + $0x578] sm:$0xff] }
 0x13a   :  { %3090 = vmatpush.bf16.msrb.mxu0 %v7307_v32  ;;  %v7401_v32 = vld [vmem:[%s9097_s2 + $0x5f8] sm:$0xff] }
 0x13b   :  { %3103 = vmatpush.bf16.msrb.mxu1 %v7315_v33 }
 0x13c   :  { %3116 = vmatpush.bf16.msrb.mxu2 %v7323_v34  ;;  %v7376_v34 = vld [vmem:[%s9097_s2 + $0x530] sm:$0xff] }
 0x13d   :  { %3322 = vmatpush.bf16.msrb.mxu3 %v7331_v35  ;;  %v7384_v35 = vld [vmem:[%s9097_s2 + $0x570] sm:$0xff] }
 0x13e   :  { %3091 = vmatpush.bf16.msrb.mxu0 %v7306_v38  ;;  %v1688_v58 = vpop.f32.mrf.mxu0  ;;  %v7375_v38 = vld [vmem:[%s9097_s2 + $0x528] sm:$0xff] }
 0x13f   :  { %3104 = vmatpush.bf16.msrb.mxu1 %v7314_v39  ;;  %v1689_v5 = vadd.f32 %v1688_v58, %v1676_v62  ;;  %v7383_v39 = vld [vmem:[%s9097_s2 + $0x568] sm:$0xff]  ;;  %v7372_v58 = vld [vmem:[%s9097_s2 + $0x510] sm:$0xff] }
 0x140   :  { %3117 = vmatpush.bf16.msrb.mxu2 %v7322_v40  ;;  %v7391_v40 = vld [vmem:[%s9097_s2 + $0x5a8] sm:$0xff] }
 0x141   :  { %3323 = vmatpush.bf16.msrb.mxu3 %v7330_v41  ;;  %3092 = vmatmul.bf16.vlgmr.msrb.gmra.mxu0 %v8516_v59  ;;  %v1894_v59 = vpop.f32.mrf.mxu1  ;;  %v1930_v14 = vmax.f32 %v1689_v5, 0.0  ;;  %v7399_v41 = vld [vmem:[%s9097_s2 + $0x5e8] sm:$0xff]  ;;  %v7378_v5 = vld [vmem:[%s9097_s2 + $0x540] sm:$0xff] }
 0x142   :  { %3329 = vmatpush.bf16.msra.mxu0 %v7345_v42  ;;  %3105 = vmatmul.bf16.vlgmr.msrb.gmra.mxu1 %v1952_v31  ;;  %v7371_v62 = vld [vmem:[%s9097_s2 + $0x508] sm:$0xff] }
 0x143   :  { %3342 = vmatpush.bf16.msra.mxu1 %v7353_v43  ;;  %3118 = vmatmul.bf16.vlgmr.msrb.gmra.mxu2 %v8630_v49 }
 0x144   :  { %3548 = vmatpush.bf16.msra.mxu2 %v7361_v45  ;;  %3324 = vmatmul.bf16.vlgmr.msrb.gmra.mxu3 %v1952_v31  ;;  %v7393_v31 = vld [vmem:[%s9097_s2 + $0x5b8] sm:$0xff]  ;;  %v7374_v45 = vld [vmem:[%s9097_s2 + $0x520] sm:$0xff] }
 0x145   :  { %3561 = vmatpush.bf16.msra.mxu3 %v7369_v46  ;;  %v7382_v46 = vld [vmem:[%s9097_s2 + $0x560] sm:$0xff] }
 0x146   :  { %3330 = vmatpush.bf16.msra.mxu0 %v7344_v47  ;;  %v1907_v3 = vpop.f32.mrf.mxu2  ;;  %v1690_v10 = vpop.f32.mrf.mxu0  ;;  %v7390_v47 = vld [vmem:[%s9097_s2 + $0x5a0] sm:$0xff] }
 0x147   :  { %3343 = vmatpush.bf16.msra.mxu1 %v7352_v48  ;;  %v1920_v4 = vpop.f32.mrf.mxu3  ;;  %v1908_v6 = vadd.f32 %v1907_v3, %v1894_v59  ;;  %v7398_v48 = vld [vmem:[%s9097_s2 + $0x5e0] sm:$0xff]  ;;  %v7380_v59 = vld [vmem:[%s9097_s2 + $0x550] sm:$0xff] }
 0x148   :  { %3549 = vmatpush.bf16.msra.mxu2 %v7360_v50  ;;  %v7381_v50 = vld [vmem:[%s9097_s2 + $0x558] sm:$0xff] }
 0x149   :  { %3562 = vmatpush.bf16.msra.mxu3 %v7368_v51  ;;  %v1921_v7 = vadd.f32 %v1920_v4, %v1908_v6  ;;  %v1896_v11 = vpop.f32.mrf.mxu1  ;;  %v7389_v51 = vld [vmem:[%s9097_s2 + $0x598] sm:$0xff]  ;;  %v7370_v4 = vld [vmem:[%s9097_s2 + $0x500] sm:$0xff] }
 0x14a   :  { %3331 = vmatpush.bf16.msra.mxu0 %v7343_v52  ;;  %v7397_v52 = vld [vmem:[%s9097_s2 + $0x5d8] sm:$0xff] }
 0x14b   :  { %3344 = vmatpush.bf16.msra.mxu1 %v7351_v53  ;;  %v1931_v15 = vmax.f32 %v1921_v7, 0.0  ;;  %v7386_v7 = vld [vmem:[%s9097_s2 + $0x580] sm:$0xff] }
 0x14c   :  { %3550 = vmatpush.bf16.msra.mxu2 %v7359_v54 }
 0x14d   :  { %3563 = vmatpush.bf16.msra.mxu3 %v7367_v55  ;;  %v8690_v16 = vpack.c.bf16 %v1931_v15, %v1930_v14 }
 0x14e   :  { %3332 = vmatpush.bf16.msra.mxu0 %v7342_v56  ;;  %v1909_v21 = vpop.f32.mrf.mxu2 }
 0x14f   :  { %3345 = vmatpush.bf16.msra.mxu1 %v7350_v57  ;;  %v1922_v22 = vpop.f32.mrf.mxu3  ;;  %v1946_v23 = vunpack.c.l.b16 %v8690_v16  ;;  %v1947_v6 = vunpack.c.h.b16 %v8690_v16 }
 0x150   :  { %3551 = vmatpush.bf16.msra.mxu2 %v7358_v60  ;;  %v7388_v60 = vld [vmem:[%s9097_s2 + $0x590] sm:$0xff] }
 0x151   :  { %3564 = vmatpush.bf16.msra.mxu3 %v7366_v61  ;;  %v8729_v33 = vpack.c.b16 %v1946_v23, %v1946_v23  ;;  %v7396_v61 = vld [vmem:[%s9097_s2 + $0x5d0] sm:$0xff] }
 0x152   :  { %3333 = vmatpush.bf16.msra.mxu0 %v7341_v63  ;;  %v7379_v63 = vld [vmem:[%s9097_s2 + $0x548] sm:$0xff] }
 0x153   :  { %3346 = vmatpush.bf16.msra.mxu1 %v7349_v0  ;;  %v7387_v0 = vld [vmem:[%s9097_s2 + $0x588] sm:$0xff] }
 0x154   :  { %3552 = vmatpush.bf16.msra.mxu2 %v7357_v1  ;;  %v7395_v1 = vld [vmem:[%s9097_s2 + $0x5c8] sm:$0xff] }
 0x155   :  { %3565 = vmatpush.bf16.msra.mxu3 %v7365_v2 }
 0x156   :  { %3334 = vmatpush.bf16.msra.mxu0 %v7340_v8  ;;  %v7394_v8 = vld [vmem:[%s9097_s2 + $0x5c0] sm:$0xff] }
 0x157   :  { %3347 = vmatpush.bf16.msra.mxu1 %v7348_v9  ;;  %v1955_v9 = vpack.c.b16 %v1947_v6, %v1947_v6  ;;  %v7423_v6 = vld [vmem:[%s9098_s3 + $0xa8] sm:$0xff] }
 0x158   :  { %3553 = vmatpush.bf16.msra.mxu2 %v7356_v12 }
 0x159   :  { %3566 = vmatpush.bf16.msra.mxu3 %v7364_v13 }
 0x15a   :  { %3335 = vmatpush.bf16.msra.mxu0 %v7339_v17 }
 0x15b   :  { %3348 = vmatpush.bf16.msra.mxu1 %v7347_v18 }
 0x15c   :  { %3554 = vmatpush.bf16.msra.mxu2 %v7355_v19 }
 0x15d   :  { %3567 = vmatpush.bf16.msra.mxu3 %v7363_v20 }
 0x15e   :  { %3336 = vmatpush.bf16.msra.mxu0 %v7338_v24  ;;  %v2165_v42 = vpop.f32.mrf.mxu0 }
 0x15f   :  { %3349 = vmatpush.bf16.msra.mxu1 %v7346_v25  ;;  %v2178_v43 = vpop.f32.mrf.mxu1 }
 0x160   :  { %3555 = vmatpush.bf16.msra.mxu2 %v7354_v27  ;;  %v2179_v44 = vadd.f32 %v2178_v43, %v2165_v42 }
 0x161   :  { %3568 = vmatpush.bf16.msra.mxu3 %v7362_v28  ;;  %3337 = vmatmul.bf16.vlgmr.msra.gmra.mxu0 %v8630_v49 }
 0x162   :  { %3574 = vmatpush.bf16.msrb.mxu0 %v7377_v29  ;;  %3350 = vmatmul.bf16.vlgmr.msra.gmra.mxu1 %v8729_v33 }
 0x163   :  { %3780 = vmatpush.bf16.msrb.mxu1 %v7385_v30  ;;  %3556 = vmatmul.bf16.vlgmr.msra.gmra.mxu2 %v8630_v49  ;;  %v7373_v49 = vld [vmem:[%s9097_s2 + $0x518] sm:$0xff]  ;;  %s7491_s2 = smov 118  }
 0x164   :  { %3793 = vmatpush.bf16.msrb.mxu2 %v7393_v31  ;;  %3569 = vmatmul.bf16.vlgmr.msra.gmra.mxu3 %v8729_v33 }
 0x165   :  { %3806 = vmatpush.bf16.msrb.mxu3 %v7401_v32 }
 0x166   :  { %3575 = vmatpush.bf16.msrb.mxu0 %v7376_v34  ;;  %v2191_v53 = vpop.f32.mrf.mxu2  ;;  %v2167_v57 = vpop.f32.mrf.mxu0 }
 0x167   :  { %3781 = vmatpush.bf16.msrb.mxu1 %v7384_v35  ;;  %v2397_v54 = vpop.f32.mrf.mxu3  ;;  %v8783_v55 = vadd.f32 %v2191_v53, %v2179_v44  ;;  %v2180_v56 = vpop.f32.mrf.mxu1 }
 0x168   :  { %3794 = vmatpush.bf16.msrb.mxu2 %v7392_v36 }
 0x169   :  { %3807 = vmatpush.bf16.msrb.mxu3 %v7400_v37 }
 0x16a   :  { %3576 = vmatpush.bf16.msrb.mxu0 %v7375_v38 }
 0x16b   :  { %3782 = vmatpush.bf16.msrb.mxu1 %v7383_v39  ;;  %v3819_v39 = vmax.f32 %v8783_v55, 0.0  ;;  %v7461_v55 = vld [vmem:[%s9098_s3 + $0x1d8] sm:$0xff] }
 0x16c   :  { %3795 = vmatpush.bf16.msrb.mxu2 %v7391_v40 }
 0x16d   :  { %3808 = vmatpush.bf16.msrb.mxu3 %v7399_v41 }
 0x16e   :  { %3577 = vmatpush.bf16.msrb.mxu0 %v7374_v45  ;;  %v2193_v2 = vpop.f32.mrf.mxu2 }
 0x16f   :  { %3783 = vmatpush.bf16.msrb.mxu1 %v7382_v46  ;;  %v2399_v3 = vpop.f32.mrf.mxu3  ;;  %v7417_v2 = vld [vmem:[%s9098_s3 + $0x78] sm:$0xff] }
 0x170   :  { %3796 = vmatpush.bf16.msrb.mxu2 %v7390_v47  ;;  %v7432_v3 = vld [vmem:[%s9098_s3 + $0xf0] sm:$0xff] }
 0x171   :  { %3809 = vmatpush.bf16.msrb.mxu3 %v7398_v48 }
 0x172   :  { %3578 = vmatpush.bf16.msrb.mxu0 %v7373_v49 }
 0x173   :  { %3784 = vmatpush.bf16.msrb.mxu1 %v7381_v50 }
 0x174   :  { %3797 = vmatpush.bf16.msrb.mxu2 %v7389_v51 }
 0x175   :  { %3810 = vmatpush.bf16.msrb.mxu3 %v7397_v52 }
 0x176   :  { %3579 = vmatpush.bf16.msrb.mxu0 %v7372_v58 }
 0x177   :  { %3785 = vmatpush.bf16.msrb.mxu1 %v7380_v59  ;;  %v7409_v59 = vld [vmem:[%s9098_s3 + $0x38] sm:$0xff] }
 0x178   :  { %3798 = vmatpush.bf16.msrb.mxu2 %v7388_v60  ;;  %v7425_v60 = vld [vmem:[%s9098_s3 + $0xb8] sm:$0xff] }
 0x179   :  { %3811 = vmatpush.bf16.msrb.mxu3 %v7396_v61  ;;  %v7433_v61 = vld [vmem:[%s9098_s3 + $0xf8] sm:$0xff] }
 0x17a   :  { %3580 = vmatpush.bf16.msrb.mxu0 %v7371_v62 }
 0x17b   :  { %3786 = vmatpush.bf16.msrb.mxu1 %v7379_v63 }
 0x17c   :  { %3799 = vmatpush.bf16.msrb.mxu2 %v7387_v0  ;;  %v7408_v0 = vld [vmem:[%s9098_s3 + $0x30] sm:$0xff] }
 0x17d   :  { %3812 = vmatpush.bf16.msrb.mxu3 %v7395_v1  ;;  %v7424_v1 = vld [vmem:[%s9098_s3 + $0xb0] sm:$0xff] }
 0x17e   :  { %3581 = vmatpush.bf16.msrb.mxu0 %v7370_v4  ;;  %v2410_v10 = vpop.f32.mrf.mxu0  ;;  %v7416_v4 = vld [vmem:[%s9098_s3 + $0x70] sm:$0xff] }
 0x17f   :  { %3787 = vmatpush.bf16.msrb.mxu1 %v7378_v5  ;;  %v2423_v11 = vpop.f32.mrf.mxu1  ;;  %v2411_v12 = vadd.f32 %v2410_v10, %v2397_v54  ;;  %v7407_v5 = vld [vmem:[%s9098_s3 + $0x28] sm:$0xff]  ;;  %v7422_v10 = vld [vmem:[%s9098_s3 + $0xa0] sm:$0xff] }
 0x180   :  { %3800 = vmatpush.bf16.msrb.mxu2 %v7386_v7  ;;  %v7431_v7 = vld [vmem:[%s9098_s3 + $0xe8] sm:$0xff] }
 0x181   :  { %3813 = vmatpush.bf16.msrb.mxu3 %v7394_v8  ;;  %3582 = vmatmul.bf16.vlgmr.msrb.gmra.mxu0 %v1955_v9  ;;  %v8824_v13 = vadd.f32 %v2423_v11, %v2411_v12  ;;  %v7415_v8 = vld [vmem:[%s9098_s3 + $0x68] sm:$0xff]  ;;  %v7430_v11 = vld [vmem:[%s9098_s3 + $0xe0] sm:$0xff] }
 0x182   :  { %3788 = vmatmul.bf16.vlgmr.msrb.gmra.mxu1 %v8729_v33  ;;  %4401 = vmatpush.bf16.msra.mxu0 %v7409_v59  ;;  %v7414_v12 = vld [vmem:[%s9098_s3 + $0x60] sm:$0xff] }
 0x183   :  { %3801 = vmatmul.bf16.vlgmr.msrb.gmra.mxu2 %v1955_v9  ;;  %v3820_v37 = vmax.f32 %v8824_v13, 0.0  ;;  %4414 = vmatpush.bf16.msra.mxu1 %v7417_v2  ;;  %v7406_v9 = vld [vmem:[%s9098_s3 + $0x20] sm:$0xff]  ;;  %v7457_v2 = vld [vmem:[%s9098_s3 + $0x1b8] sm:$0xff] }
 0x184   :  { %3814 = vmatmul.bf16.vlgmr.msrb.gmra.mxu3 %v7490_v26  ;;  %4427 = vmatpush.bf16.msra.mxu2 %v7425_v60  ;;  %v7438_v59 = vld [vmem:[%s9098_s3 + $0x120] sm:$0xff]  ;;  %v7437_v60 = vld [vmem:[%s9098_s3 + $0x118] sm:$0xff] }
 0x185   :  { %v7473_v44 = vpack.i.bf16 %v3820_v37, %v3819_v39  ;;  %4440 = vmatpush.bf16.msra.mxu3 %v7433_v61  ;;  %v7436_v61 = vld [vmem:[%s9098_s3 + $0x110] sm:$0xff]  ;;  %v7453_v13 = vld [vmem:[%s9098_s3 + $0x198] sm:$0xff] }
 0x186   :  { %v2629_v14 = vpop.f32.mrf.mxu2  ;;  %v2412_v16 = vpop.f32.mrf.mxu0  ;;  %4402 = vmatpush.bf16.msra.mxu0 %v7408_v0 }
 0x187   :  { %v2642_v15 = vpop.f32.mrf.mxu3  ;;  %v2425_v17 = vpop.f32.mrf.mxu1  ;;  %4415 = vmatpush.bf16.msra.mxu1 %v7416_v4  ;;  %v7429_v16 = vld [vmem:[%s9098_s3 + $0xd8] sm:$0xff] }
 0x188   :  { %v2643_v27 = vadd.f32 %v2642_v15, %v2629_v14  ;;  %4428 = vmatpush.bf16.msra.mxu2 %v7424_v1  ;;  %v7405_v14 = vld [vmem:[%s9098_s3 + $0x18] sm:$0xff] }
 0x189   :  { %4441 = vmatpush.bf16.msra.mxu3 %v7432_v3  ;;  %v7421_v15 = vld [vmem:[%s9098_s3 + $0x98] sm:$0xff] }
 0x18a   :  { %4403 = vmatpush.bf16.msra.mxu0 %v7407_v5  ;;  %v7449_v1 = vld [vmem:[%s9098_s3 + $0x178] sm:$0xff] }
 0x18b   :  { %4416 = vmatpush.bf16.msra.mxu1 %v7415_v8  ;;  %v7465_v3 = vld [vmem:[%s9098_s3 + $0x1f8] sm:$0xff] }
 0x18c   :  { %4429 = vmatpush.bf16.msra.mxu2 %v7423_v6  ;;  %v7448_v6 = vld [vmem:[%s9098_s3 + $0x170] sm:$0xff] }
 0x18d   :  { %4442 = vmatpush.bf16.msra.mxu3 %v7431_v7  ;;  %v7456_v7 = vld [vmem:[%s9098_s3 + $0x1b0] sm:$0xff] }
 0x18e   :  { %v2631_v18 = vpop.f32.mrf.mxu2  ;;  %4404 = vmatpush.bf16.msra.mxu0 %v7406_v9  ;;  %v7464_v9 = vld [vmem:[%s9098_s3 + $0x1f0] sm:$0xff] }
 0x18f   :  { %v2644_v19 = vpop.f32.mrf.mxu3  ;;  %4417 = vmatpush.bf16.msra.mxu1 %v7414_v12  ;;  %v7447_v12 = vld [vmem:[%s9098_s3 + $0x168] sm:$0xff] }
 0x190   :  { %4430 = vmatpush.bf16.msra.mxu2 %v7422_v10  ;;  %v7404_v19 = vld [vmem:[%s9098_s3 + $0x10] sm:$0xff] }
 0x191   :  { %4443 = vmatpush.bf16.msra.mxu3 %v7430_v11 }
 0x192   :  { %4405 = vmatpush.bf16.msra.mxu0 %v7405_v14  ;;  %v7455_v14 = vld [vmem:[%s9098_s3 + $0x1a8] sm:$0xff] }
 0x194   :  { %4431 = vmatpush.bf16.msra.mxu2 %v7421_v15  ;;  %v7463_v15 = vld [vmem:[%s9098_s3 + $0x1e8] sm:$0xff] }
 0x195   :  { %4444 = vmatpush.bf16.msra.mxu3 %v7429_v16 }
 0x196   :  { %4406 = vmatpush.bf16.msra.mxu0 %v7404_v19  ;;  %v7446_v19 = vld [vmem:[%s9098_s3 + $0x160] sm:$0xff] }
 0x19e   :  { %v2655_v20 = vpop.f32.mrf.mxu0 }
 0x19f   :  { %v2861_v21 = vpop.f32.mrf.mxu1  ;;  %v8826_v28 = vadd.f32 %v2655_v20, %v2643_v27  ;;  %v7420_v20 = vld [vmem:[%s9098_s3 + $0x90] sm:$0xff] }
 0x1a0   :  { %4432 = vmatpush.bf16.msra.mxu2 %v7420_v20  ;;  %v7454_v20 = vld [vmem:[%s9098_s3 + $0x1a0] sm:$0xff] }
 0x1a1   :  { %v3821_v31 = vmax.f32 %v8826_v28, 0.0 }
 0x1a6   :  { %v2874_v22 = vpop.f32.mrf.mxu2  ;;  %v2657_v23 = vpop.f32.mrf.mxu0 }
 0x1a7   :  { %v2863_v24 = vpop.f32.mrf.mxu1  ;;  %v2875_v26 = vadd.f32 %v2874_v22, %v2861_v21  ;;  %v7428_v21 = vld [vmem:[%s9098_s3 + $0xd0] sm:$0xff]  ;;  %v7403_v23 = vld [vmem:[%s9098_s3 + $0x8] sm:$0xff] }
 0x1a8   :  { %4445 = vmatpush.bf16.msra.mxu3 %v7428_v21  ;;  %4407 = vmatpush.bf16.msra.mxu0 %v7403_v23 }
 0x1ae   :  { %v2876_v25 = vpop.f32.mrf.mxu2  ;;  %v2887_v29 = vpop.f32.mrf.mxu3 }
 0x1af   :  { %v8828_v30 = vadd.f32 %v2887_v29, %v2875_v26 }
 0x1b1   :  { %v3822_v32 = vmax.f32 %v8828_v30, 0.0  ;;  %v7445_v30 = vld [vmem:[%s9098_s3 + $0x158] sm:$0xff] }
 0x1b3   :  { %v7468_v35 = vpack.i.bf16 %v3822_v32, %v3821_v31 }
 0x1b5   :  { %7469 = vrot.lane.b32.xlu0 %v7468_v35, %s7491_s2  ;;  %v7402_v35 = vld [vmem:[%s9098_s3] sm:$0xff] }
 0x1b6   :  { %v2889_v36 = vpop.f32.mrf.mxu3  ;;  %4408 = vmatpush.bf16.msra.mxu0 %v7402_v35 }
 0x1bd   :  { %7474 = vrot.lane.b32.xlu0 %v7473_v44, %s7491_s2  ;;  %v7413_v44 = vld [vmem:[%s9098_s3 + $0x58] sm:$0xff] }
 0x1be   :  { %v3093_v33 = vpop.f32.mrf.mxu0  ;;  %4418 = vmatpush.bf16.msra.mxu1 %v7413_v44 }
 0x1bf   :  { %v3106_v34 = vpop.f32.mrf.mxu1 }
 0x1c0   :  { %v3107_v38 = vadd.f32 %v3106_v34, %v3093_v33 }
 0x1c6   :  { %v3119_v40 = vpop.f32.mrf.mxu2  ;;  %v3095_v42 = vpop.f32.mrf.mxu0 }
 0x1c7   :  { %v8839_v41 = vadd.f32 %v3119_v40, %v3107_v38  ;;  %v3108_v43 = vpop.f32.mrf.mxu1  ;;  %v3325_v46 = vpop.f32.mrf.mxu3 }
 0x1c9   :  { %v3823_v45 = vmax.f32 %v8839_v41, 0.0  ;;  %v7442_v41 = vld [vmem:[%s9098_s3 + $0x140] sm:$0xff] }
 0x1cb   :  { %3843 = vrot.lane.b32.xlu1 %v3823_v45, %s7491_s2 }
 0x1ce   :  { %v3121_v47 = vpop.f32.mrf.mxu2 }
 0x1cf   :  { %v3327_v48 = vpop.f32.mrf.mxu3  ;;  %v7441_v47 = vld [vmem:[%s9098_s3 + $0x138] sm:$0xff] }
 0x1d0   :  { %v7427_v48 = vld [vmem:[%s9098_s3 + $0xc8] sm:$0xff]  ;;  %4453 = vmatpush.bf16.msrb.mxu0 %v7441_v47 }
 0x1d1   :  { %4446 = vmatpush.bf16.msra.mxu3 %v7427_v48  ;;  %v7451_v47 = vld [vmem:[%s9098_s3 + $0x188] sm:$0xff] }
 0x1d2   :  { %v7459_v48 = vld [vmem:[%s9098_s3 + $0x1c8] sm:$0xff] }
 0x1de   :  { %v3338_v49 = vpop.f32.mrf.mxu0 }
 0x1df   :  { %v3351_v50 = vpop.f32.mrf.mxu1  ;;  %v3339_v51 = vadd.f32 %v3338_v49, %v3325_v46  ;;  %v7419_v46 = vld [vmem:[%s9098_s3 + $0x88] sm:$0xff]  ;;  %v7412_v49 = vld [vmem:[%s9098_s3 + $0x50] sm:$0xff] }
 0x1e0   :  { %4433 = vmatpush.bf16.msra.mxu2 %v7419_v46  ;;  %4419 = vmatpush.bf16.msra.mxu1 %v7412_v49  ;;  %v7443_v46 = vld [vmem:[%s9098_s3 + $0x148] sm:$0xff]  ;;  %v7458_v49 = vld [vmem:[%s9098_s3 + $0x1c0] sm:$0xff] }
 0x1e1   :  { %v8850_v52 = vadd.f32 %v3351_v50, %v3339_v51  ;;  %v7418_v50 = vld [vmem:[%s9098_s3 + $0x80] sm:$0xff]  ;;  %v7440_v51 = vld [vmem:[%s9098_s3 + $0x130] sm:$0xff] }
 0x1e2   :  { %4454 = vmatpush.bf16.msrb.mxu0 %v7440_v51 }
 0x1e3   :  { %v3824_v53 = vmax.f32 %v8850_v52, 0.0 }
 0x1e4   :  { %4434 = vmatpush.bf16.msra.mxu2 %v7418_v50 }
 0x1e5   :  { %3845 = vrot.lane.b32.xlu2 %v3824_v53, %s7491_s2 }
 0x1e6   :  { %v3557_v54 = vpop.f32.mrf.mxu2  ;;  %v3340_v57 = vpop.f32.mrf.mxu0 }
 0x1e7   :  { %v3570_v56 = vpop.f32.mrf.mxu3  ;;  %v3353_v58 = vpop.f32.mrf.mxu1  ;;  %v7439_v57 = vld [vmem:[%s9098_s3 + $0x128] sm:$0xff] }
 0x1e8   :  { %v3571_v22 = vadd.f32 %v3570_v56, %v3557_v54  ;;  %v7426_v54 = vld [vmem:[%s9098_s3 + $0xc0] sm:$0xff]  ;;  %v7411_v56 = vld [vmem:[%s9098_s3 + $0x48] sm:$0xff]  ;;  %4455 = vmatpush.bf16.msrb.mxu0 %v7439_v57  ;;  %4479 = vmatpush.bf16.msrb.mxu2 %v7457_v2 }
 0x1e9   :  { %4447 = vmatpush.bf16.msra.mxu3 %v7426_v54  ;;  %4420 = vmatpush.bf16.msra.mxu1 %v7411_v56  ;;  %v7410_v58 = vld [vmem:[%s9098_s3 + $0x40] sm:$0xff] }
 0x1ec   :  { %4456 = vmatpush.bf16.msrb.mxu0 %v7438_v59  ;;  %4480 = vmatpush.bf16.msrb.mxu2 %v7456_v7 }
 0x1ed   :  { %4421 = vmatpush.bf16.msra.mxu1 %v7410_v58  ;;  %4492 = vmatpush.bf16.msrb.mxu3 %v7465_v3 }
 0x1ee   :  { %v3559_v62 = vpop.f32.mrf.mxu2 }
 0x1ef   :  { %v3572_v63 = vpop.f32.mrf.mxu3  ;;  %v7435_v62 = vld [vmem:[%s9098_s3 + $0x108] sm:$0xff] }
 0x1f0   :  { %4457 = vmatpush.bf16.msrb.mxu0 %v7437_v60  ;;  %v7434_v63 = vld [vmem:[%s9098_s3 + $0x100] sm:$0xff]  ;;  %4481 = vmatpush.bf16.msrb.mxu2 %v7455_v14 }
 0x1f1   :  { %4466 = vmatpush.bf16.msrb.mxu1 %v7449_v1  ;;  %4493 = vmatpush.bf16.msrb.mxu3 %v7464_v9 }
 0x1f4   :  { %4458 = vmatpush.bf16.msrb.mxu0 %v7436_v61  ;;  %4482 = vmatpush.bf16.msrb.mxu2 %v7454_v20  ;;  %v4506_v20 = vld [vmem:[%s9101_s5] sm:$0x1] }
 0x1f5   :  { %4467 = vmatpush.bf16.msrb.mxu1 %v7448_v6  ;;  %4494 = vmatpush.bf16.msrb.mxu3 %v7463_v15 }
 0x1f8   :  { %4459 = vmatpush.bf16.msrb.mxu0 %v7435_v62  ;;  %4483 = vmatpush.bf16.msrb.mxu2 %v7453_v13 }
 0x1f9   :  { %4468 = vmatpush.bf16.msrb.mxu1 %v7447_v12 }
 0x1fc   :  { %4460 = vmatpush.bf16.msrb.mxu0 %v7434_v63 }
 0x1fd   :  { %4469 = vmatpush.bf16.msrb.mxu1 %v7446_v19 }
 0x1fe   :  { %v3583_v17 = vpop.f32.mrf.mxu0 }
 0x1ff   :  { %v3789_v18 = vpop.f32.mrf.mxu1  ;;  %v8925_v27 = vadd.f32 %v3583_v17, %v3571_v22 }
 0x201   :  { %v3825_v36 = vmax.f32 %v8925_v27, 0.0  ;;  %4470 = vmatpush.bf16.msrb.mxu1 %v7445_v30 }
 0x206   :  { %v3802_v24 = vpop.f32.mrf.mxu2  ;;  %v3585_v29 = vpop.f32.mrf.mxu0 }
 0x207   :  { %v3815_v25 = vpop.f32.mrf.mxu3  ;;  %v3803_v26 = vadd.f32 %v3802_v24, %v3789_v18  ;;  %v3791_v33 = vpop.f32.mrf.mxu1  ;;  %v7462_v29 = vld [vmem:[%s9098_s3 + $0x1e0] sm:$0xff] }
 0x208   :  { %4495 = vmatpush.bf16.msrb.mxu3 %v7462_v29 }
 0x209   :  { %v8927_v34 = vadd.f32 %v3815_v25, %v3803_v26 }
 0x20b   :  { %v3826_v38 = vmax.f32 %v8927_v34, 0.0  ;;  %v12_v34 = vstv %s9100_s6 }
 0x20c   :  { %4496 = vmatpush.bf16.msrb.mxu3 %v7461_v55  ;;  %13 = vst [vmem:[#allocation2] sm:$0x1] %v12_v34 }
 0x20d   :  { %v7478_v40 = vpack.i.bf16 %v3826_v38, %v3825_v36 }
 0x20e   :  { %v3804_v42 = vpop.f32.mrf.mxu2 }
 0x20f   :  { %v3817_v43 = vpop.f32.mrf.mxu3  ;;  %7479 = vrot.lane.b32.xlu1 %v7478_v40, %s7491_s2  ;;  %v7460_v40 = vld [vmem:[%s9098_s3 + $0x1d0] sm:$0xff] }
 0x210   :  { %4497 = vmatpush.bf16.msrb.mxu3 %v7460_v40 }
 0x214   :  { %4498 = vmatpush.bf16.msrb.mxu3 %v7459_v48 }
 0x218   :  { %4499 = vmatpush.bf16.msrb.mxu3 %v7458_v49 }
 0x227   :  { %v7470_v0 = vpop.permute.xlu0 %7469 }
 0x228   :  { %v7472_v4 = vunpack.i.h.bf16 %v7470_v0  ;;  %v7471_v5 = vunpack.i.l.bf16 %v7470_v0 }
 0x22a   :  { %v3854_v8 = vsel %vm3851_vm0, %v7471_v5, %v7472_v4 }
 0x22b   :  { %v3871_v10 = vmax.f32 %v3821_v31, %v3854_v8  ;;  %v4507_v8 = vld [vmem:[#allocation2] sm:$0x1] }
 0x22c   :  { %4510 = vperm.xlu2 %7483, %v4507_v8  }
 0x22d   :  { %v3879_v11 = vpack.c.bf16 %v3871_v10, %v3871_v10 }
 0x22f   :  { %4435 = vmatmul.bf16.vlgmr.msra.gmra.mxu2 %v3879_v11  ;;  %v7475_v16 = vpop.permute.xlu0 %7474 }
 0x230   :  { %v7477_v31 = vunpack.i.h.bf16 %v7475_v16  ;;  %v7476_v17 = vunpack.i.l.bf16 %v7475_v16 }
 0x232   :  { %v3853_v22 = vsel %vm3851_vm0, %v7477_v31, %v7471_v5  ;;  %v3852_v23 = vsel %vm3851_vm0, %v7476_v17, %v7477_v31 }
 0x233   :  { %v3870_v24 = vmax.f32 %v3820_v37, %v3853_v22  ;;  %v3869_v25 = vmax.f32 %v3819_v39, %v3852_v23  ;;  %v7452_v37 = vld [vmem:[%s9098_s3 + $0x190] sm:$0xff] }
 0x234   :  { %4484 = vmatpush.bf16.msrb.mxu2 %v7452_v37 }
 0x235   :  { %v3878_v33 = vpack.c.bf16 %v3870_v24, %v3870_v24  ;;  %v3877_v35 = vpack.c.bf16 %v3869_v25, %v3869_v25 }
 0x237   :  { %4409 = vmatmul.bf16.vlgmr.msra.gmra.mxu0 %v3877_v35  ;;  %4422 = vmatmul.bf16.vlgmr.msra.gmra.mxu1 %v3878_v33 }
 0x238   :  { %4485 = vmatpush.bf16.msrb.mxu2 %v7451_v47 }
 0x23d   :  { %v3844_v28 = vpop.permute.xlu1 %3843 }
 0x23e   :  { %v3855_v18 = vsel %vm3851_vm0, %v7472_v4, %v3844_v28 }
 0x23f   :  { %v3872_v21 = vmax.f32 %v3822_v32, %v3855_v18  ;;  %v7444_v32 = vld [vmem:[%s9098_s3 + $0x150] sm:$0xff]  ;;  %v3846_v39 = vpop.permute.xlu2 %3845 }
 0x240   :  { %4471 = vmatpush.bf16.msrb.mxu1 %v7444_v32  ;;  %v3856_v42 = vsel %vm3851_vm0, %v3844_v28, %v3846_v39 }
 0x241   :  { %v3880_v26 = vpack.c.bf16 %v3872_v21, %v3872_v21  ;;  %v3873_v43 = vmax.f32 %v3823_v45, %v3856_v42  ;;  %v7450_v45 = vld [vmem:[%s9098_s3 + $0x180] sm:$0xff] }
 0x242   :  { %4486 = vmatpush.bf16.msrb.mxu2 %v7450_v45 }
 0x243   :  { %4448 = vmatmul.bf16.vlgmr.msra.gmra.mxu3 %v3880_v26  ;;  %v3881_v44 = vpack.c.bf16 %v3873_v43, %v3873_v43 }
 0x244   :  { %4472 = vmatpush.bf16.msrb.mxu1 %v7443_v46 }
 0x247   :  { %4461 = vmatmul.bf16.vlgmr.msrb.gmra.mxu0 %v3881_v44 }
 0x248   :  { %4473 = vmatpush.bf16.msrb.mxu1 %v7442_v41 }
 0x281   :  { %v7480_v50 = vpop.permute.xlu1 %7479 }
 0x282   :  { %v7482_v51 = vunpack.i.h.bf16 %v7480_v50  ;;  %v7481_v54 = vunpack.i.l.bf16 %v7480_v50 }
 0x284   :  { %v3857_v56 = vsel %vm3851_vm0, %v3846_v39, %v7481_v54  ;;  %v3858_v57 = vsel %vm3851_vm0, %v7481_v54, %v7482_v51  ;;  %v3868_v58 = vsel %vm3851_vm0, %v7482_v51, %v7476_v17 }
 0x285   :  { %v3874_v59 = vmax.f32 %v3824_v53, %v3857_v56  ;;  %v3875_v60 = vmax.f32 %v3825_v36, %v3858_v57  ;;  %v3876_v61 = vmax.f32 %v3826_v38, %v3868_v58  ;;  %v7485_v36 = vld [vmem:[%s9099_s4] ss:$0 sm:$0xff] }
 0x286   :  { %v4511_v23 = vpop.permute.xlu2 %4510 }
 0x287   :  { %v3882_v62 = vpack.c.bf16 %v3874_v59, %v3874_v59  ;;  %v3883_v63 = vpack.c.bf16 %v3875_v60, %v3875_v60  ;;  %v3884_v0 = vpack.c.bf16 %v3876_v61, %v3876_v61  ;;  %v4513_v24 = vperm.slane %v4511_v23, 0 }
 0x289   :  { %4474 = vmatmul.bf16.vlgmr.msrb.gmra.mxu1 %v3882_v62  ;;  %4487 = vmatmul.bf16.vlgmr.msrb.gmra.mxu2 %v3883_v63 }
 0x28a   :  { %4500 = vmatmul.bf16.vlgmr.msrb.gmra.mxu3 %v3884_v0 }
 0x2b2   :  { %v4436_v1 = vpop.f32.mrf.mxu2 }
 0x2b4   :  { %v4410_v2 = vpop.f32.mrf.mxu0  ;;  %v4423_v3 = vpop.f32.mrf.mxu1 }
 0x2b5   :  { %v4411_v38 = vadd.f32 %v7485_v36, %v4410_v2 }
 0x2b7   :  { %v4424_v9 = vadd.f32 %v4423_v3, %v4411_v38 }
 0x2b9   :  { %v4437_v10 = vadd.f32 %v4436_v1, %v4424_v9 }
 0x2ba   :  { %v4438_v5 = vpop.f32.mrf.mxu2 }
 0x2bc   :  { %v4412_v6 = vpop.f32.mrf.mxu0  ;;  %v4425_v52 = vpop.f32.mrf.mxu1 }
 0x2c4   :  { %v4462_v7 = vpop.f32.mrf.mxu0 }
 0x2c6   :  { %v4449_v4 = vpop.f32.mrf.mxu3 }
 0x2c7   :  { %v4450_v12 = vadd.f32 %v4449_v4, %v4437_v10 }
 0x2c9   :  { %v4463_v14 = vadd.f32 %v4462_v7, %v4450_v12 }
 0x2cc   :  { %v4464_v27 = vpop.f32.mrf.mxu0 }
 0x2ce   :  { %v4451_v53 = vpop.f32.mrf.mxu3 }
 0x306   :  { %v4475_v11 = vpop.f32.mrf.mxu1 }
 0x307   :  { %v4476_v15 = vadd.f32 %v4475_v11, %v4463_v14 }
 0x30c   :  { %v4488_v16 = vpop.f32.mrf.mxu2 }
 0x30d   :  { %v4489_v28 = vadd.f32 %v4488_v16, %v4476_v15  ;;  %v4501_v31 = vpop.f32.mrf.mxu3 }
 0x30e   :  { %v4477_v17 = vpop.f32.mrf.mxu1 }
 0x30f   :  { %v4502_v18 = vadd.f32 %v4501_v31, %v4489_v28 }
 0x311   :  { %v4505_v19 = vmax.f32 %v4502_v18, 0.0 }
 0x313   :  { %7016 = vmatpush.xpose.msk.msra.mxu0 %vm4514_vm1, %v4505_v19 }
 0x314   :  { %v4490_v21 = vpop.f32.mrf.mxu2 }
 0x315   :  { %v4503_v22 = vpop.f32.mrf.mxu3 }
 0x316   :  { %7017 = vmatmul.msk.f32.vlgmr.msra.gmra.mxu0 %vm4514_vm1, %v4506_v20 }
 0x393   :  { %v4538_v25 = vpop.f32.mrf.mxu0 }
 0x394   :  { %v4539_v26 = vadd.f32 %v4538_v25, %v4513_v24 }
 0x396   :  { %v4541_v29 = vsub.f32 0.0, %v4539_v26 }
 0x398   :  { %v4542_v33 = vmul.f32 1.442695, %v4541_v29 }
 0x39a   :  { %7486 = vpow2.f32 %v4542_v33 }
 0x3a0   :  { %v7487_v35 = vpop.eup %7486 }
 0x3a1   :  { %v4544_v30 = vadd.f32 1.0, %v7487_v35 }
 0x3a3   :  { %7488 = vrcp.f32 %v4544_v30 }
 0x3a9   :  { %v7489_v13 = vpop.eup %7488 }
 0x3aa   :  { %4547 = vst.msk [vmem:[%s9102_s7] sm:$0x1] %vm4546_vm2, %v7489_v13 }

</bundles_post_ra>
